<compile_context>
chip_gen: v5e
topology: v5e:2x2
jax: 0.10.0
libtpu: 0.0.40
codegen_flags: <defaults>
</compile_context>

<pallas_src>
import functools

import jax
import jax.numpy as jnp
import numpy as np
from jax.experimental import pallas as pl
from jax.experimental.pallas import tpu as pltpu


def _reg_loss_kernel(flags_ref, nvalid_ref, ind_ref, feat_ref, target_ref,
                     out_ref, *, batch, offsets, jitters):
    """Kernel refs:
      flags_ref : SMEM (n_off,) int32 -- 1 iff candidate j is valid
      nvalid_ref: SMEM (1,)    int32 -- number of valid candidates
      ind_ref   : VMEM (4B, 1) int32 -- flat center index, channel-major repeat
      feat_ref  : VMEM (4B, WH) f32  -- channel-major flattened feature map
      target_ref: VMEM (B, 4)  f32
      out_ref   : VMEM (1, 1)  f32   -- scalar loss
    """
    B = batch
    FB, WH = feat_ref.shape

    feat = feat_ref[...]                                     # (4B, WH)
    ind_col = ind_ref[...]                                   # (4B, 1) int32
    iota = jax.lax.broadcasted_iota(jnp.int32, (FB, WH), 1)  # (4B, WH) int32
    onehot0 = (iota == ind_col).astype(jnp.float32)          # 1 at ind[b], per row

    t_l = target_ref[:, 0:1]
    t_r = target_ref[:, 1:2]
    t_t = target_ref[:, 2:3]
    t_b = target_ref[:, 3:4]

    inv_b = jnp.float32(1.0 / B)

    def gather(onehot):
        # pred[c*B + b] = feat[b, c, idx[b]]  (idx encoded by the one-hot rows)
        pflat = jnp.sum(feat * onehot, axis=1, keepdims=True)   # (4B, 1)
        return (pflat[0:B], pflat[B:2 * B], pflat[2 * B:3 * B], pflat[3 * B:4 * B])

    def iou_mean(pred, tl, tr, tt, tb):
        # IOULoss with reduction='mean' (weight=None). Returns (1, 1).
        p_l, p_r, p_t, p_b = pred
        target_area = (tl + tr) * (tt + tb)
        pred_area = (p_l + p_r) * (p_t + p_b)
        w_int = jnp.minimum(p_l, tl) + jnp.minimum(p_r, tr)
        h_int = jnp.minimum(p_b, tb) + jnp.minimum(p_t, tt)
        area_int = w_int * h_int
        area_union = target_area + pred_area - area_int
        losses = -jnp.log((area_int + 1.0) / (area_union + 1.0))   # (B, 1)
        return jnp.sum(losses, axis=0, keepdims=True) * inv_b      # (1, 1)

    out_ref[...] = jnp.zeros_like(out_ref)

    # Statically unrolled loop over the (2r+1)^2 radius offsets.  Each candidate
    # is gated by its precomputed validity flag (SMEM scalar), so invalid
    # offsets skip the gather and the IOU entirely.
    for j, (off, (dwn, dhn)) in enumerate(zip(offsets, jitters)):
        @pl.when(flags_ref[j] == 1)
        def _(off=off, dwn=dwn, dhn=dhn):
            # shifted one-hot: center one-hot moved by off (ind + r_h*W + r_w),
            # done on the lane axis (XLU shuffle), no per-candidate compare.
            oh = onehot0 if off == 0 else jnp.roll(onehot0, off, axis=1)
            pred = gather(oh)
            loss = iou_mean(pred, t_l + dwn, t_r - dwn, t_t + dhn, t_b - dhn)
            out_ref[...] += loss

    @pl.when(nvalid_ref[0] > 0)
    def _():
        out_ref[...] = out_ref[...] / nvalid_ref[0].astype(jnp.float32)

    # Fallback (no valid candidate): gather with the original ind - gated so it
    # costs nothing in the common case; reuses the center one-hot.
    @pl.when(nvalid_ref[0] == 0)
    def _():
        pred = gather(onehot0)
        out_ref[...] = iou_mean(pred, t_l, t_r, t_t, t_b)


def reg_loss(output, ind, target, radius=1, norm=1.0 / 20.0, dim=4):
    """Pallas implementation of REGLoss.forward."""
    width, height = output.shape[-2], output.shape[-1]
    output = output.reshape(-1, dim, width, height).astype(jnp.float32)
    target = target.reshape(-1, dim).astype(jnp.float32)
    ind_i = ind.reshape(-1).astype(jnp.int32)
    B = output.shape[0]
    wh = width * height

    # channel-major, lane-dense feature map: feat2[c*B + b, i] = output[b, c, i//H, i%H]
    # (identical flat-index semantics to permute(0,2,3,1).view(B, W*H, C)).
    feat2 = jnp.transpose(output.reshape(B, dim, wh), (1, 0, 2)).reshape(dim * B, wh)
    ind_rep = jnp.tile(ind_i, dim).reshape(dim * B, 1)

    # ---- tiny per-candidate validity flags, computed outside the kernel ----
    center_w = (ind_i % width).astype(jnp.float32)
    center_h = (ind_i // width).astype(jnp.float32)
    wf = jnp.float32(width)

    flags = []
    offsets = []
    jitters = []
    for r_w in range(-radius, radius + 1):
        for r_h in range(-radius, radius + 1):
            twl = target[:, 0] + r_w * norm
            twr = target[:, 1] - r_w * norm
            tht = target[:, 2] + r_h * norm
            thb = target[:, 3] - r_h * norm
            bad_t = (jnp.any(twl < 0.0) | jnp.any(twr < 0.0)
                     | jnp.any(tht < 0.0) | jnp.any(thb < 0.0))
            ch = center_h + r_h
            cw = center_w + r_w
            # NOTE: replicates the reference module, which checks *both*
            # coordinates against `width`.
            bad_c = (jnp.any(ch < 0.0) | jnp.any(ch >= wf)
                     | jnp.any(cw < 0.0) | jnp.any(cw >= wf))
            flags.append(jnp.logical_not(bad_t | bad_c))
            offsets.append(r_h * width + r_w)            # ind_curr = ind + off
            jitters.append((r_w * norm, r_h * norm))
    flags = jnp.stack(flags).astype(jnp.int32)              # (n_off,)
    n_valid = jnp.sum(flags, dtype=jnp.int32).reshape(1)    # (1,)

    kernel = functools.partial(_reg_loss_kernel, batch=B,
                               offsets=tuple(offsets), jitters=tuple(jitters))
    out = pl.pallas_call(
        kernel,
        out_shape=jax.ShapeDtypeStruct((1, 1), jnp.float32),
        in_specs=[
            pl.BlockSpec(memory_space=pltpu.MemorySpace.SMEM),   # flags
            pl.BlockSpec(memory_space=pltpu.MemorySpace.SMEM),   # n_valid
            pl.BlockSpec(memory_space=pltpu.MemorySpace.VMEM),   # ind_rep
            pl.BlockSpec(memory_space=pltpu.MemorySpace.VMEM),   # feat2
            pl.BlockSpec(memory_space=pltpu.MemorySpace.VMEM),   # target
        ],
        out_specs=pl.BlockSpec(memory_space=pltpu.MemorySpace.VMEM),
    )(flags, n_valid, ind_rep, feat2, target)
    return out[0, 0]


def reg_loss_ref(output, ind, target, radius=1, norm=1.0 / 20.0, dim=4):
    """Pure NumPy replica of the PyTorch module (for verification)."""
    output = np.asarray(output, np.float32)
    ind = np.asarray(ind)
    target = np.asarray(target, np.float32)
    W, H = output.shape[-2], output.shape[-1]
    output = output.reshape(-1, dim, W, H)
    target = target.reshape(-1, dim)
    ind = ind.reshape(-1, 1)
    B = output.shape[0]
    cw = (ind % W).astype(np.float32)
    ch = (ind / W).astype(np.int64).astype(np.float32)
    feat = np.transpose(output, (0, 2, 3, 1)).reshape(B, W * H, dim)

    def gather(idx):
        return feat[np.arange(B), idx[:, 0].astype(np.int64), :]

    def iou_mean(pred, tgt):
        p_l, p_r, p_t, p_b = pred[:, 0], pred[:, 1], pred[:, 2], pred[:, 3]
        tl, tr, tt, tb = tgt[:, 0], tgt[:, 1], tgt[:, 2], tgt[:, 3]
        ta = (tl + tr) * (tt + tb)
        pa = (p_l + p_r) * (p_t + p_b)
        wi = np.minimum(p_l, tl) + np.minimum(p_r, tr)
        hi = np.minimum(p_b, tb) + np.minimum(p_t, tt)
        ai = wi * hi
        au = ta + pa - ai
        return float(np.mean(-np.log((ai + 1.0) / (au + 1.0))))

    losses = []
    for r_w in range(-radius, radius + 1):
        for r_h in range(-radius, radius + 1):
            twl = target[:, 0] + r_w * norm
            twr = target[:, 1] - r_w * norm
            tht = target[:, 2] + r_h * norm
            thb = target[:, 3] - r_h * norm
            if (twl < 0).any() or (twr < 0).any() or (tht < 0).any() or (thb < 0).any():
                continue
            if ((ch + r_h < 0).any() or (ch + r_h >= W).any()
                    or (cw + r_w < 0).any() or (cw + r_w >= W).any()):
                continue
            tgt_curr = np.stack([twl, twr, tht, thb], axis=1)
            ind_curr = ((ch + r_h) * W + (cw + r_w)).astype(np.int64)
            losses.append(iou_mean(gather(ind_curr), tgt_curr))
    if len(losses) == 0:
        return iou_mean(gather(ind), target)
    return float(np.mean(losses))


if __name__ == "__main__":
    key = jax.random.PRNGKey(0)
    k1, k2, k3 = jax.random.split(key, 3)
    B, C, W, H = 8, 4, 16, 16
    output = jax.random.uniform(k1, (B, C, W, H), jnp.float32, 0.0, 1.0)
    target = jax.random.uniform(k2, (B, C), jnp.float32, 0.1, 1.0)
    ind = jax.random.randint(k3, (B,), 0, W * H, jnp.int32)

    # 1) generic case (most/all of the 9 jittered candidates are valid)
    loss = jax.block_until_ready(reg_loss(output, ind, target, radius=1, norm=1.0 / 20.0, dim=C))
    ref = reg_loss_ref(output, ind, target, radius=1, norm=1.0 / 20.0, dim=C)
    np.testing.assert_allclose(np.asarray(loss), ref, rtol=1e-4, atol=1e-5)

    # 2) partially-valid case: a corner center knocks out some candidates,
    #    exercising the pl.when gating of individual offsets.
    ind2 = ind.at[0].set(0)
    loss2 = jax.block_until_ready(reg_loss(output, ind2, target, radius=1, norm=1.0 / 20.0, dim=C))
    ref2 = reg_loss_ref(output, ind2, target, radius=1, norm=1.0 / 20.0, dim=C)
    np.testing.assert_allclose(np.asarray(loss2), ref2, rtol=1e-4, atol=1e-5)

    # 3) fallback case: non-square map + large flat indices make every candidate
    #    fail the (width-based) coordinate check -> gated fallback path.
    H3 = 32
    output3 = jax.random.uniform(k1, (B, C, W, H3), jnp.float32, 0.0, 1.0)
    ind3 = jax.random.randint(k3, (B,), W * W, W * H3, jnp.int32)
    loss3 = jax.block_until_ready(reg_loss(output3, ind3, target, radius=1, norm=1.0 / 20.0, dim=C))
    ref3 = reg_loss_ref(output3, ind3, target, radius=1, norm=1.0 / 20.0, dim=C)
    np.testing.assert_allclose(np.asarray(loss3), ref3, rtol=1e-4, atol=1e-5)

    print("KERNEL_OK")
</pallas_src>

<mosaic_0001>
module attributes {stable_mosaic.version = 11 : i64} {
  func.func @_reg_loss_kernel(%arg0: memref<9xi32, #tpu.memory_space<smem>>, %arg1: memref<1xi32, #tpu.memory_space<smem>>, %arg2: memref<32x1xi32, #tpu.memory_space<vmem>>, %arg3: memref<32x256xf32, #tpu.memory_space<vmem>>, %arg4: memref<8x4xf32, #tpu.memory_space<vmem>>, %arg5: memref<1x1xf32, #tpu.memory_space<vmem>>) attributes {dimension_semantics = [], scalar_prefetch = 0 : i64, scratch_operands = 0 : i64, tpu.core_type = #tpu.core_type<tc>} {
    %c0 = arith.constant 0 : index
    %c0_0 = arith.constant 0 : index
    %0 = vector.load %arg3[%c0, %c0_0] : memref<32x256xf32, #tpu.memory_space<vmem>>, vector<32x256xf32>
    %c0_1 = arith.constant 0 : index
    %c0_2 = arith.constant 0 : index
    %1 = vector.load %arg2[%c0_1, %c0_2] : memref<32x1xi32, #tpu.memory_space<vmem>>, vector<32x1xi32>
    %2 = tpu.iota {dimensions = array<i32: 1>} : vector<32x256xi32>
    %3 = vector.broadcast %1 : vector<32x1xi32> to vector<32x256xi32>
    %4 = arith.cmpi eq, %2, %3 : vector<32x256xi32>
    %5 = arith.extui %4 : vector<32x256xi1> to vector<32x256xi32>
    %6 = arith.sitofp %5 : vector<32x256xi32> to vector<32x256xf32>
    %c0_3 = arith.constant 0 : index
    %c0_4 = arith.constant 0 : index
    %7 = vector.load %arg4[%c0_3, %c0_4] : memref<8x4xf32, #tpu.memory_space<vmem>>, vector<8x1xf32>
    %c0_5 = arith.constant 0 : index
    %c1 = arith.constant 1 : index
    %8 = vector.load %arg4[%c0_5, %c1] : memref<8x4xf32, #tpu.memory_space<vmem>>, vector<8x1xf32>
    %c0_6 = arith.constant 0 : index
    %c2 = arith.constant 2 : index
    %9 = vector.load %arg4[%c0_6, %c2] : memref<8x4xf32, #tpu.memory_space<vmem>>, vector<8x1xf32>
    %c0_7 = arith.constant 0 : index
    %c3 = arith.constant 3 : index
    %10 = vector.load %arg4[%c0_7, %c3] : memref<8x4xf32, #tpu.memory_space<vmem>>, vector<8x1xf32>
    %cst = arith.constant 0.000000e+00 : f32
    %11 = vector.broadcast %cst : f32 to vector<1x1xf32>
    %c0_8 = arith.constant 0 : index
    %c0_9 = arith.constant 0 : index
    %12 = vector.load %arg5[%c0_8, %c0_9] : memref<1x1xf32, #tpu.memory_space<vmem>>, vector<1x1xf32>
    tpu.vector_store %arg5[%c0_8, %c0_9], %11 {strides = array<i32>} : memref<1x1xf32, #tpu.memory_space<vmem>>, vector<1x1xf32>,
    %c0_10 = arith.constant 0 : index
    %13 = memref.load %arg0[%c0_10] : memref<9xi32, #tpu.memory_space<smem>>
    %c1_i32 = arith.constant 1 : i32
    %14 = arith.cmpi eq, %13, %c1_i32 : i32
    %15 = arith.extui %14 : i1 to i32
    %cst_11 = arith.constant 1.250000e-01 : f32
    %c0_i32 = arith.constant 0 : i32
    %16 = arith.cmpi ne, %15, %c0_i32 : i32
    scf.if %16 {
      %57 = vector.extract_strided_slice %6 {offsets = [0, 17], sizes = [32, 239], strides = [1, 1]} : vector<32x256xf32> to vector<32x239xf32>
      %58 = vector.extract_strided_slice %6 {offsets = [0, 0], sizes = [32, 17], strides = [1, 1]} : vector<32x256xf32> to vector<32x17xf32>
      %59 = tpu.concatenate %57, %58 in 1 : vector<32x239xf32>, vector<32x17xf32> -> vector<32x256xf32>
      %60 = arith.mulf %0, %59 : vector<32x256xf32>
      %cst_46 = arith.constant dense<0.000000e+00> : vector<32xf32>
      %61 = vector.multi_reduction <add>, %60, %cst_46 [1] : vector<32x256xf32> to vector<32xf32>
      %62 = vector.shape_cast %61 : vector<32xf32> to vector<32x1xf32>
      %63 = vector.extract_strided_slice %62 {offsets = [0, 0], sizes = [8, 1], strides = [1, 1]} : vector<32x1xf32> to vector<8x1xf32>
      %64 = vector.extract_strided_slice %62 {offsets = [8, 0], sizes = [8, 1], strides = [1, 1]} : vector<32x1xf32> to vector<8x1xf32>
      %65 = vector.extract_strided_slice %62 {offsets = [16, 0], sizes = [8, 1], strides = [1, 1]} : vector<32x1xf32> to vector<8x1xf32>
      %66 = vector.extract_strided_slice %62 {offsets = [24, 0], sizes = [8, 1], strides = [1, 1]} : vector<32x1xf32> to vector<8x1xf32>
      %cst_47 = arith.constant -5.000000e-02 : f32
      %67 = vector.broadcast %cst_47 : f32 to vector<8x1xf32>
      %68 = arith.addf %7, %67 : vector<8x1xf32>
      %cst_48 = arith.constant -5.000000e-02 : f32
      %69 = vector.broadcast %cst_48 : f32 to vector<8x1xf32>
      %70 = arith.subf %8, %69 : vector<8x1xf32>
      %cst_49 = arith.constant -5.000000e-02 : f32
      %71 = vector.broadcast %cst_49 : f32 to vector<8x1xf32>
      %72 = arith.addf %9, %71 : vector<8x1xf32>
      %cst_50 = arith.constant -5.000000e-02 : f32
      %73 = vector.broadcast %cst_50 : f32 to vector<8x1xf32>
      %74 = arith.subf %10, %73 : vector<8x1xf32>
      %75 = arith.addf %68, %70 : vector<8x1xf32>
      %76 = arith.addf %72, %74 : vector<8x1xf32>
      %77 = arith.mulf %75, %76 : vector<8x1xf32>
      %78 = arith.addf %63, %64 : vector<8x1xf32>
      %79 = arith.addf %65, %66 : vector<8x1xf32>
      %80 = arith.mulf %78, %79 : vector<8x1xf32>
      %81 = arith.minimumf %63, %68 : vector<8x1xf32>
      %82 = arith.minimumf %64, %70 : vector<8x1xf32>
      %83 = arith.addf %81, %82 : vector<8x1xf32>
      %84 = arith.minimumf %66, %74 : vector<8x1xf32>
      %85 = arith.minimumf %65, %72 : vector<8x1xf32>
      %86 = arith.addf %84, %85 : vector<8x1xf32>
      %87 = arith.mulf %83, %86 : vector<8x1xf32>
      %88 = arith.addf %77, %80 : vector<8x1xf32>
      %89 = arith.subf %88, %87 : vector<8x1xf32>
      %cst_51 = arith.constant 1.000000e+00 : f32
      %90 = vector.broadcast %cst_51 : f32 to vector<8x1xf32>
      %91 = arith.addf %87, %90 : vector<8x1xf32>
      %cst_52 = arith.constant 1.000000e+00 : f32
      %92 = vector.broadcast %cst_52 : f32 to vector<8x1xf32>
      %93 = arith.addf %89, %92 : vector<8x1xf32>
      %94 = arith.divf %91, %93 : vector<8x1xf32>
      %95 = math.log %94 : vector<8x1xf32>
      %cst_53 = arith.constant 0.000000e+00 : f32
      %96 = vector.broadcast %cst_53 : f32 to vector<8x1xf32>
      %97 = arith.subf %96, %95 : vector<8x1xf32>
      %cst_54 = arith.constant dense<0.000000e+00> : vector<1xf32>
      %98 = vector.multi_reduction <add>, %97, %cst_54 [0] : vector<8x1xf32> to vector<1xf32>
      %99 = vector.shape_cast %98 : vector<1xf32> to vector<1x1xf32>
      %100 = vector.broadcast %cst_11 : f32 to vector<1x1xf32>
      %101 = arith.mulf %99, %100 : vector<1x1xf32>
      %c0_55 = arith.constant 0 : index
      %c0_56 = arith.constant 0 : index
      %102 = vector.load %arg5[%c0_55, %c0_56] : memref<1x1xf32, #tpu.memory_space<vmem>>, vector<1x1xf32>
      %103 = arith.addf %102, %101 : vector<1x1xf32>
      %c0_57 = arith.constant 0 : index
      %c0_58 = arith.constant 0 : index
      %104 = vector.load %arg5[%c0_57, %c0_58] : memref<1x1xf32, #tpu.memory_space<vmem>>, vector<1x1xf32>
      tpu.vector_store %arg5[%c0_57, %c0_58], %103 {strides = array<i32>} : memref<1x1xf32, #tpu.memory_space<vmem>>, vector<1x1xf32>,
    } else {
    }
    %c1_12 = arith.constant 1 : index
    %17 = memref.load %arg0[%c1_12] : memref<9xi32, #tpu.memory_space<smem>>
    %c1_i32_13 = arith.constant 1 : i32
    %18 = arith.cmpi eq, %17, %c1_i32_13 : i32
    %19 = arith.extui %18 : i1 to i32
    %cst_14 = arith.constant 1.250000e-01 : f32
    %c0_i32_15 = arith.constant 0 : i32
    %20 = arith.cmpi ne, %19, %c0_i32_15 : i32
    scf.if %20 {
      %57 = vector.extract_strided_slice %6 {offsets = [0, 1], sizes = [32, 255], strides = [1, 1]} : vector<32x256xf32> to vector<32x255xf32>
      %58 = vector.extract_strided_slice %6 {offsets = [0, 0], sizes = [32, 1], strides = [1, 1]} : vector<32x256xf32> to vector<32x1xf32>
      %59 = tpu.concatenate %57, %58 in 1 : vector<32x255xf32>, vector<32x1xf32> -> vector<32x256xf32>
      %60 = arith.mulf %0, %59 : vector<32x256xf32>
      %cst_46 = arith.constant dense<0.000000e+00> : vector<32xf32>
      %61 = vector.multi_reduction <add>, %60, %cst_46 [1] : vector<32x256xf32> to vector<32xf32>
      %62 = vector.shape_cast %61 : vector<32xf32> to vector<32x1xf32>
      %63 = vector.extract_strided_slice %62 {offsets = [0, 0], sizes = [8, 1], strides = [1, 1]} : vector<32x1xf32> to vector<8x1xf32>
      %64 = vector.extract_strided_slice %62 {offsets = [8, 0], sizes = [8, 1], strides = [1, 1]} : vector<32x1xf32> to vector<8x1xf32>
      %65 = vector.extract_strided_slice %62 {offsets = [16, 0], sizes = [8, 1], strides = [1, 1]} : vector<32x1xf32> to vector<8x1xf32>
      %66 = vector.extract_strided_slice %62 {offsets = [24, 0], sizes = [8, 1], strides = [1, 1]} : vector<32x1xf32> to vector<8x1xf32>
      %cst_47 = arith.constant -5.000000e-02 : f32
      %67 = vector.broadcast %cst_47 : f32 to vector<8x1xf32>
      %68 = arith.addf %7, %67 : vector<8x1xf32>
      %cst_48 = arith.constant -5.000000e-02 : f32
      %69 = vector.broadcast %cst_48 : f32 to vector<8x1xf32>
      %70 = arith.subf %8, %69 : vector<8x1xf32>
      %cst_49 = arith.constant 0.000000e+00 : f32
      %71 = vector.broadcast %cst_49 : f32 to vector<8x1xf32>
      %72 = arith.addf %9, %71 : vector<8x1xf32>
      %cst_50 = arith.constant 0.000000e+00 : f32
      %73 = vector.broadcast %cst_50 : f32 to vector<8x1xf32>
      %74 = arith.subf %10, %73 : vector<8x1xf32>
      %75 = arith.addf %68, %70 : vector<8x1xf32>
      %76 = arith.addf %72, %74 : vector<8x1xf32>
      %77 = arith.mulf %75, %76 : vector<8x1xf32>
      %78 = arith.addf %63, %64 : vector<8x1xf32>
      %79 = arith.addf %65, %66 : vector<8x1xf32>
      %80 = arith.mulf %78, %79 : vector<8x1xf32>
      %81 = arith.minimumf %63, %68 : vector<8x1xf32>
      %82 = arith.minimumf %64, %70 : vector<8x1xf32>
      %83 = arith.addf %81, %82 : vector<8x1xf32>
      %84 = arith.minimumf %66, %74 : vector<8x1xf32>
      %85 = arith.minimumf %65, %72 : vector<8x1xf32>
      %86 = arith.addf %84, %85 : vector<8x1xf32>
      %87 = arith.mulf %83, %86 : vector<8x1xf32>
      %88 = arith.addf %77, %80 : vector<8x1xf32>
      %89 = arith.subf %88, %87 : vector<8x1xf32>
      %cst_51 = arith.constant 1.000000e+00 : f32
      %90 = vector.broadcast %cst_51 : f32 to vector<8x1xf32>
      %91 = arith.addf %87, %90 : vector<8x1xf32>
      %cst_52 = arith.constant 1.000000e+00 : f32
      %92 = vector.broadcast %cst_52 : f32 to vector<8x1xf32>
      %93 = arith.addf %89, %92 : vector<8x1xf32>
      %94 = arith.divf %91, %93 : vector<8x1xf32>
      %95 = math.log %94 : vector<8x1xf32>
      %cst_53 = arith.constant 0.000000e+00 : f32
      %96 = vector.broadcast %cst_53 : f32 to vector<8x1xf32>
      %97 = arith.subf %96, %95 : vector<8x1xf32>
      %cst_54 = arith.constant dense<0.000000e+00> : vector<1xf32>
      %98 = vector.multi_reduction <add>, %97, %cst_54 [0] : vector<8x1xf32> to vector<1xf32>
      %99 = vector.shape_cast %98 : vector<1xf32> to vector<1x1xf32>
      %100 = vector.broadcast %cst_14 : f32 to vector<1x1xf32>
      %101 = arith.mulf %99, %100 : vector<1x1xf32>
      %c0_55 = arith.constant 0 : index
      %c0_56 = arith.constant 0 : index
      %102 = vector.load %arg5[%c0_55, %c0_56] : memref<1x1xf32, #tpu.memory_space<vmem>>, vector<1x1xf32>
      %103 = arith.addf %102, %101 : vector<1x1xf32>
      %c0_57 = arith.constant 0 : index
      %c0_58 = arith.constant 0 : index
      %104 = vector.load %arg5[%c0_57, %c0_58] : memref<1x1xf32, #tpu.memory_space<vmem>>, vector<1x1xf32>
      tpu.vector_store %arg5[%c0_57, %c0_58], %103 {strides = array<i32>} : memref<1x1xf32, #tpu.memory_space<vmem>>, vector<1x1xf32>,
    } else {
    }
    %c2_16 = arith.constant 2 : index
    %21 = memref.load %arg0[%c2_16] : memref<9xi32, #tpu.memory_space<smem>>
    %c1_i32_17 = arith.constant 1 : i32
    %22 = arith.cmpi eq, %21, %c1_i32_17 : i32
    %23 = arith.extui %22 : i1 to i32
    %cst_18 = arith.constant 1.250000e-01 : f32
    %c0_i32_19 = arith.constant 0 : i32
    %24 = arith.cmpi ne, %23, %c0_i32_19 : i32
    scf.if %24 {
      %57 = vector.extract_strided_slice %6 {offsets = [0, 241], sizes = [32, 15], strides = [1, 1]} : vector<32x256xf32> to vector<32x15xf32>
      %58 = vector.extract_strided_slice %6 {offsets = [0, 0], sizes = [32, 241], strides = [1, 1]} : vector<32x256xf32> to vector<32x241xf32>
      %59 = tpu.concatenate %57, %58 in 1 : vector<32x15xf32>, vector<32x241xf32> -> vector<32x256xf32>
      %60 = arith.mulf %0, %59 : vector<32x256xf32>
      %cst_46 = arith.constant dense<0.000000e+00> : vector<32xf32>
      %61 = vector.multi_reduction <add>, %60, %cst_46 [1] : vector<32x256xf32> to vector<32xf32>
      %62 = vector.shape_cast %61 : vector<32xf32> to vector<32x1xf32>
      %63 = vector.extract_strided_slice %62 {offsets = [0, 0], sizes = [8, 1], strides = [1, 1]} : vector<32x1xf32> to vector<8x1xf32>
      %64 = vector.extract_strided_slice %62 {offsets = [8, 0], sizes = [8, 1], strides = [1, 1]} : vector<32x1xf32> to vector<8x1xf32>
      %65 = vector.extract_strided_slice %62 {offsets = [16, 0], sizes = [8, 1], strides = [1, 1]} : vector<32x1xf32> to vector<8x1xf32>
      %66 = vector.extract_strided_slice %62 {offsets = [24, 0], sizes = [8, 1], strides = [1, 1]} : vector<32x1xf32> to vector<8x1xf32>
      %cst_47 = arith.constant -5.000000e-02 : f32
      %67 = vector.broadcast %cst_47 : f32 to vector<8x1xf32>
      %68 = arith.addf %7, %67 : vector<8x1xf32>
      %cst_48 = arith.constant -5.000000e-02 : f32
      %69 = vector.broadcast %cst_48 : f32 to vector<8x1xf32>
      %70 = arith.subf %8, %69 : vector<8x1xf32>
      %cst_49 = arith.constant 5.000000e-02 : f32
      %71 = vector.broadcast %cst_49 : f32 to vector<8x1xf32>
      %72 = arith.addf %9, %71 : vector<8x1xf32>
      %cst_50 = arith.constant 5.000000e-02 : f32
      %73 = vector.broadcast %cst_50 : f32 to vector<8x1xf32>
      %74 = arith.subf %10, %73 : vector<8x1xf32>
      %75 = arith.addf %68, %70 : vector<8x1xf32>
      %76 = arith.addf %72, %74 : vector<8x1xf32>
      %77 = arith.mulf %75, %76 : vector<8x1xf32>
      %78 = arith.addf %63, %64 : vector<8x1xf32>
      %79 = arith.addf %65, %66 : vector<8x1xf32>
      %80 = arith.mulf %78, %79 : vector<8x1xf32>
      %81 = arith.minimumf %63, %68 : vector<8x1xf32>
      %82 = arith.minimumf %64, %70 : vector<8x1xf32>
      %83 = arith.addf %81, %82 : vector<8x1xf32>
      %84 = arith.minimumf %66, %74 : vector<8x1xf32>
      %85 = arith.minimumf %65, %72 : vector<8x1xf32>
      %86 = arith.addf %84, %85 : vector<8x1xf32>
      %87 = arith.mulf %83, %86 : vector<8x1xf32>
      %88 = arith.addf %77, %80 : vector<8x1xf32>
      %89 = arith.subf %88, %87 : vector<8x1xf32>
      %cst_51 = arith.constant 1.000000e+00 : f32
      %90 = vector.broadcast %cst_51 : f32 to vector<8x1xf32>
      %91 = arith.addf %87, %90 : vector<8x1xf32>
      %cst_52 = arith.constant 1.000000e+00 : f32
      %92 = vector.broadcast %cst_52 : f32 to vector<8x1xf32>
      %93 = arith.addf %89, %92 : vector<8x1xf32>
      %94 = arith.divf %91, %93 : vector<8x1xf32>
      %95 = math.log %94 : vector<8x1xf32>
      %cst_53 = arith.constant 0.000000e+00 : f32
      %96 = vector.broadcast %cst_53 : f32 to vector<8x1xf32>
      %97 = arith.subf %96, %95 : vector<8x1xf32>
      %cst_54 = arith.constant dense<0.000000e+00> : vector<1xf32>
      %98 = vector.multi_reduction <add>, %97, %cst_54 [0] : vector<8x1xf32> to vector<1xf32>
      %99 = vector.shape_cast %98 : vector<1xf32> to vector<1x1xf32>
      %100 = vector.broadcast %cst_18 : f32 to vector<1x1xf32>
      %101 = arith.mulf %99, %100 : vector<1x1xf32>
      %c0_55 = arith.constant 0 : index
      %c0_56 = arith.constant 0 : index
      %102 = vector.load %arg5[%c0_55, %c0_56] : memref<1x1xf32, #tpu.memory_space<vmem>>, vector<1x1xf32>
      %103 = arith.addf %102, %101 : vector<1x1xf32>
      %c0_57 = arith.constant 0 : index
      %c0_58 = arith.constant 0 : index
      %104 = vector.load %arg5[%c0_57, %c0_58] : memref<1x1xf32, #tpu.memory_space<vmem>>, vector<1x1xf32>
      tpu.vector_store %arg5[%c0_57, %c0_58], %103 {strides = array<i32>} : memref<1x1xf32, #tpu.memory_space<vmem>>, vector<1x1xf32>,
    } else {
    }
    %c3_20 = arith.constant 3 : index
    %25 = memref.load %arg0[%c3_20] : memref<9xi32, #tpu.memory_space<smem>>
    %c1_i32_21 = arith.constant 1 : i32
    %26 = arith.cmpi eq, %25, %c1_i32_21 : i32
    %27 = arith.extui %26 : i1 to i32
    %cst_22 = arith.constant 1.250000e-01 : f32
    %c0_i32_23 = arith.constant 0 : i32
    %28 = arith.cmpi ne, %27, %c0_i32_23 : i32
    scf.if %28 {
      %57 = vector.extract_strided_slice %6 {offsets = [0, 16], sizes = [32, 240], strides = [1, 1]} : vector<32x256xf32> to vector<32x240xf32>
      %58 = vector.extract_strided_slice %6 {offsets = [0, 0], sizes = [32, 16], strides = [1, 1]} : vector<32x256xf32> to vector<32x16xf32>
      %59 = tpu.concatenate %57, %58 in 1 : vector<32x240xf32>, vector<32x16xf32> -> vector<32x256xf32>
      %60 = arith.mulf %0, %59 : vector<32x256xf32>
      %cst_46 = arith.constant dense<0.000000e+00> : vector<32xf32>
      %61 = vector.multi_reduction <add>, %60, %cst_46 [1] : vector<32x256xf32> to vector<32xf32>
      %62 = vector.shape_cast %61 : vector<32xf32> to vector<32x1xf32>
      %63 = vector.extract_strided_slice %62 {offsets = [0, 0], sizes = [8, 1], strides = [1, 1]} : vector<32x1xf32> to vector<8x1xf32>
      %64 = vector.extract_strided_slice %62 {offsets = [8, 0], sizes = [8, 1], strides = [1, 1]} : vector<32x1xf32> to vector<8x1xf32>
      %65 = vector.extract_strided_slice %62 {offsets = [16, 0], sizes = [8, 1], strides = [1, 1]} : vector<32x1xf32> to vector<8x1xf32>
      %66 = vector.extract_strided_slice %62 {offsets = [24, 0], sizes = [8, 1], strides = [1, 1]} : vector<32x1xf32> to vector<8x1xf32>
      %cst_47 = arith.constant 0.000000e+00 : f32
      %67 = vector.broadcast %cst_47 : f32 to vector<8x1xf32>
      %68 = arith.addf %7, %67 : vector<8x1xf32>
      %cst_48 = arith.constant 0.000000e+00 : f32
      %69 = vector.broadcast %cst_48 : f32 to vector<8x1xf32>
      %70 = arith.subf %8, %69 : vector<8x1xf32>
      %cst_49 = arith.constant -5.000000e-02 : f32
      %71 = vector.broadcast %cst_49 : f32 to vector<8x1xf32>
      %72 = arith.addf %9, %71 : vector<8x1xf32>
      %cst_50 = arith.constant -5.000000e-02 : f32
      %73 = vector.broadcast %cst_50 : f32 to vector<8x1xf32>
      %74 = arith.subf %10, %73 : vector<8x1xf32>
      %75 = arith.addf %68, %70 : vector<8x1xf32>
      %76 = arith.addf %72, %74 : vector<8x1xf32>
      %77 = arith.mulf %75, %76 : vector<8x1xf32>
      %78 = arith.addf %63, %64 : vector<8x1xf32>
      %79 = arith.addf %65, %66 : vector<8x1xf32>
      %80 = arith.mulf %78, %79 : vector<8x1xf32>
      %81 = arith.minimumf %63, %68 : vector<8x1xf32>
      %82 = arith.minimumf %64, %70 : vector<8x1xf32>
      %83 = arith.addf %81, %82 : vector<8x1xf32>
      %84 = arith.minimumf %66, %74 : vector<8x1xf32>
      %85 = arith.minimumf %65, %72 : vector<8x1xf32>
      %86 = arith.addf %84, %85 : vector<8x1xf32>
      %87 = arith.mulf %83, %86 : vector<8x1xf32>
      %88 = arith.addf %77, %80 : vector<8x1xf32>
      %89 = arith.subf %88, %87 : vector<8x1xf32>
      %cst_51 = arith.constant 1.000000e+00 : f32
      %90 = vector.broadcast %cst_51 : f32 to vector<8x1xf32>
      %91 = arith.addf %87, %90 : vector<8x1xf32>
      %cst_52 = arith.constant 1.000000e+00 : f32
      %92 = vector.broadcast %cst_52 : f32 to vector<8x1xf32>
      %93 = arith.addf %89, %92 : vector<8x1xf32>
      %94 = arith.divf %91, %93 : vector<8x1xf32>
      %95 = math.log %94 : vector<8x1xf32>
      %cst_53 = arith.constant 0.000000e+00 : f32
      %96 = vector.broadcast %cst_53 : f32 to vector<8x1xf32>
      %97 = arith.subf %96, %95 : vector<8x1xf32>
      %cst_54 = arith.constant dense<0.000000e+00> : vector<1xf32>
      %98 = vector.multi_reduction <add>, %97, %cst_54 [0] : vector<8x1xf32> to vector<1xf32>
      %99 = vector.shape_cast %98 : vector<1xf32> to vector<1x1xf32>
      %100 = vector.broadcast %cst_22 : f32 to vector<1x1xf32>
      %101 = arith.mulf %99, %100 : vector<1x1xf32>
      %c0_55 = arith.constant 0 : index
      %c0_56 = arith.constant 0 : index
      %102 = vector.load %arg5[%c0_55, %c0_56] : memref<1x1xf32, #tpu.memory_space<vmem>>, vector<1x1xf32>
      %103 = arith.addf %102, %101 : vector<1x1xf32>
      %c0_57 = arith.constant 0 : index
      %c0_58 = arith.constant 0 : index
      %104 = vector.load %arg5[%c0_57, %c0_58] : memref<1x1xf32, #tpu.memory_space<vmem>>, vector<1x1xf32>
      tpu.vector_store %arg5[%c0_57, %c0_58], %103 {strides = array<i32>} : memref<1x1xf32, #tpu.memory_space<vmem>>, vector<1x1xf32>,
    } else {
    }
    %c4 = arith.constant 4 : index
    %29 = memref.load %arg0[%c4] : memref<9xi32, #tpu.memory_space<smem>>
    %c1_i32_24 = arith.constant 1 : i32
    %30 = arith.cmpi eq, %29, %c1_i32_24 : i32
    %31 = arith.extui %30 : i1 to i32
    %cst_25 = arith.constant 1.250000e-01 : f32
    %c0_i32_26 = arith.constant 0 : i32
    %32 = arith.cmpi ne, %31, %c0_i32_26 : i32
    scf.if %32 {
      %57 = arith.mulf %0, %6 : vector<32x256xf32>
      %cst_46 = arith.constant dense<0.000000e+00> : vector<32xf32>
      %58 = vector.multi_reduction <add>, %57, %cst_46 [1] : vector<32x256xf32> to vector<32xf32>
      %59 = vector.shape_cast %58 : vector<32xf32> to vector<32x1xf32>
      %60 = vector.extract_strided_slice %59 {offsets = [0, 0], sizes = [8, 1], strides = [1, 1]} : vector<32x1xf32> to vector<8x1xf32>
      %61 = vector.extract_strided_slice %59 {offsets = [8, 0], sizes = [8, 1], strides = [1, 1]} : vector<32x1xf32> to vector<8x1xf32>
      %62 = vector.extract_strided_slice %59 {offsets = [16, 0], sizes = [8, 1], strides = [1, 1]} : vector<32x1xf32> to vector<8x1xf32>
      %63 = vector.extract_strided_slice %59 {offsets = [24, 0], sizes = [8, 1], strides = [1, 1]} : vector<32x1xf32> to vector<8x1xf32>
      %cst_47 = arith.constant 0.000000e+00 : f32
      %64 = vector.broadcast %cst_47 : f32 to vector<8x1xf32>
      %65 = arith.addf %7, %64 : vector<8x1xf32>
      %cst_48 = arith.constant 0.000000e+00 : f32
      %66 = vector.broadcast %cst_48 : f32 to vector<8x1xf32>
      %67 = arith.subf %8, %66 : vector<8x1xf32>
      %cst_49 = arith.constant 0.000000e+00 : f32
      %68 = vector.broadcast %cst_49 : f32 to vector<8x1xf32>
      %69 = arith.addf %9, %68 : vector<8x1xf32>
      %cst_50 = arith.constant 0.000000e+00 : f32
      %70 = vector.broadcast %cst_50 : f32 to vector<8x1xf32>
      %71 = arith.subf %10, %70 : vector<8x1xf32>
      %72 = arith.addf %65, %67 : vector<8x1xf32>
      %73 = arith.addf %69, %71 : vector<8x1xf32>
      %74 = arith.mulf %72, %73 : vector<8x1xf32>
      %75 = arith.addf %60, %61 : vector<8x1xf32>
      %76 = arith.addf %62, %63 : vector<8x1xf32>
      %77 = arith.mulf %75, %76 : vector<8x1xf32>
      %78 = arith.minimumf %60, %65 : vector<8x1xf32>
      %79 = arith.minimumf %61, %67 : vector<8x1xf32>
      %80 = arith.addf %78, %79 : vector<8x1xf32>
      %81 = arith.minimumf %63, %71 : vector<8x1xf32>
      %82 = arith.minimumf %62, %69 : vector<8x1xf32>
      %83 = arith.addf %81, %82 : vector<8x1xf32>
      %84 = arith.mulf %80, %83 : vector<8x1xf32>
      %85 = arith.addf %74, %77 : vector<8x1xf32>
      %86 = arith.subf %85, %84 : vector<8x1xf32>
      %cst_51 = arith.constant 1.000000e+00 : f32
      %87 = vector.broadcast %cst_51 : f32 to vector<8x1xf32>
      %88 = arith.addf %84, %87 : vector<8x1xf32>
      %cst_52 = arith.constant 1.000000e+00 : f32
      %89 = vector.broadcast %cst_52 : f32 to vector<8x1xf32>
      %90 = arith.addf %86, %89 : vector<8x1xf32>
      %91 = arith.divf %88, %90 : vector<8x1xf32>
      %92 = math.log %91 : vector<8x1xf32>
      %cst_53 = arith.constant 0.000000e+00 : f32
      %93 = vector.broadcast %cst_53 : f32 to vector<8x1xf32>
      %94 = arith.subf %93, %92 : vector<8x1xf32>
      %cst_54 = arith.constant dense<0.000000e+00> : vector<1xf32>
      %95 = vector.multi_reduction <add>, %94, %cst_54 [0] : vector<8x1xf32> to vector<1xf32>
      %96 = vector.shape_cast %95 : vector<1xf32> to vector<1x1xf32>
      %97 = vector.broadcast %cst_25 : f32 to vector<1x1xf32>
      %98 = arith.mulf %96, %97 : vector<1x1xf32>
      %c0_55 = arith.constant 0 : index
      %c0_56 = arith.constant 0 : index
      %99 = vector.load %arg5[%c0_55, %c0_56] : memref<1x1xf32, #tpu.memory_space<vmem>>, vector<1x1xf32>
      %100 = arith.addf %99, %98 : vector<1x1xf32>
      %c0_57 = arith.constant 0 : index
      %c0_58 = arith.constant 0 : index
      %101 = vector.load %arg5[%c0_57, %c0_58] : memref<1x1xf32, #tpu.memory_space<vmem>>, vector<1x1xf32>
      tpu.vector_store %arg5[%c0_57, %c0_58], %100 {strides = array<i32>} : memref<1x1xf32, #tpu.memory_space<vmem>>, vector<1x1xf32>,
    } else {
    }
    %c5 = arith.constant 5 : index
    %33 = memref.load %arg0[%c5] : memref<9xi32, #tpu.memory_space<smem>>
    %c1_i32_27 = arith.constant 1 : i32
    %34 = arith.cmpi eq, %33, %c1_i32_27 : i32
    %35 = arith.extui %34 : i1 to i32
    %cst_28 = arith.constant 1.250000e-01 : f32
    %c0_i32_29 = arith.constant 0 : i32
    %36 = arith.cmpi ne, %35, %c0_i32_29 : i32
    scf.if %36 {
      %57 = vector.extract_strided_slice %6 {offsets = [0, 240], sizes = [32, 16], strides = [1, 1]} : vector<32x256xf32> to vector<32x16xf32>
      %58 = vector.extract_strided_slice %6 {offsets = [0, 0], sizes = [32, 240], strides = [1, 1]} : vector<32x256xf32> to vector<32x240xf32>
      %59 = tpu.concatenate %57, %58 in 1 : vector<32x16xf32>, vector<32x240xf32> -> vector<32x256xf32>
      %60 = arith.mulf %0, %59 : vector<32x256xf32>
      %cst_46 = arith.constant dense<0.000000e+00> : vector<32xf32>
      %61 = vector.multi_reduction <add>, %60, %cst_46 [1] : vector<32x256xf32> to vector<32xf32>
      %62 = vector.shape_cast %61 : vector<32xf32> to vector<32x1xf32>
      %63 = vector.extract_strided_slice %62 {offsets = [0, 0], sizes = [8, 1], strides = [1, 1]} : vector<32x1xf32> to vector<8x1xf32>
      %64 = vector.extract_strided_slice %62 {offsets = [8, 0], sizes = [8, 1], strides = [1, 1]} : vector<32x1xf32> to vector<8x1xf32>
      %65 = vector.extract_strided_slice %62 {offsets = [16, 0], sizes = [8, 1], strides = [1, 1]} : vector<32x1xf32> to vector<8x1xf32>
      %66 = vector.extract_strided_slice %62 {offsets = [24, 0], sizes = [8, 1], strides = [1, 1]} : vector<32x1xf32> to vector<8x1xf32>
      %cst_47 = arith.constant 0.000000e+00 : f32
      %67 = vector.broadcast %cst_47 : f32 to vector<8x1xf32>
      %68 = arith.addf %7, %67 : vector<8x1xf32>
      %cst_48 = arith.constant 0.000000e+00 : f32
      %69 = vector.broadcast %cst_48 : f32 to vector<8x1xf32>
      %70 = arith.subf %8, %69 : vector<8x1xf32>
      %cst_49 = arith.constant 5.000000e-02 : f32
      %71 = vector.broadcast %cst_49 : f32 to vector<8x1xf32>
      %72 = arith.addf %9, %71 : vector<8x1xf32>
      %cst_50 = arith.constant 5.000000e-02 : f32
      %73 = vector.broadcast %cst_50 : f32 to vector<8x1xf32>
      %74 = arith.subf %10, %73 : vector<8x1xf32>
      %75 = arith.addf %68, %70 : vector<8x1xf32>
      %76 = arith.addf %72, %74 : vector<8x1xf32>
      %77 = arith.mulf %75, %76 : vector<8x1xf32>
      %78 = arith.addf %63, %64 : vector<8x1xf32>
      %79 = arith.addf %65, %66 : vector<8x1xf32>
      %80 = arith.mulf %78, %79 : vector<8x1xf32>
      %81 = arith.minimumf %63, %68 : vector<8x1xf32>
      %82 = arith.minimumf %64, %70 : vector<8x1xf32>
      %83 = arith.addf %81, %82 : vector<8x1xf32>
      %84 = arith.minimumf %66, %74 : vector<8x1xf32>
      %85 = arith.minimumf %65, %72 : vector<8x1xf32>
      %86 = arith.addf %84, %85 : vector<8x1xf32>
      %87 = arith.mulf %83, %86 : vector<8x1xf32>
      %88 = arith.addf %77, %80 : vector<8x1xf32>
      %89 = arith.subf %88, %87 : vector<8x1xf32>
      %cst_51 = arith.constant 1.000000e+00 : f32
      %90 = vector.broadcast %cst_51 : f32 to vector<8x1xf32>
      %91 = arith.addf %87, %90 : vector<8x1xf32>
      %cst_52 = arith.constant 1.000000e+00 : f32
      %92 = vector.broadcast %cst_52 : f32 to vector<8x1xf32>
      %93 = arith.addf %89, %92 : vector<8x1xf32>
      %94 = arith.divf %91, %93 : vector<8x1xf32>
      %95 = math.log %94 : vector<8x1xf32>
      %cst_53 = arith.constant 0.000000e+00 : f32
      %96 = vector.broadcast %cst_53 : f32 to vector<8x1xf32>
      %97 = arith.subf %96, %95 : vector<8x1xf32>
      %cst_54 = arith.constant dense<0.000000e+00> : vector<1xf32>
      %98 = vector.multi_reduction <add>, %97, %cst_54 [0] : vector<8x1xf32> to vector<1xf32>
      %99 = vector.shape_cast %98 : vector<1xf32> to vector<1x1xf32>
      %100 = vector.broadcast %cst_28 : f32 to vector<1x1xf32>
      %101 = arith.mulf %99, %100 : vector<1x1xf32>
      %c0_55 = arith.constant 0 : index
      %c0_56 = arith.constant 0 : index
      %102 = vector.load %arg5[%c0_55, %c0_56] : memref<1x1xf32, #tpu.memory_space<vmem>>, vector<1x1xf32>
      %103 = arith.addf %102, %101 : vector<1x1xf32>
      %c0_57 = arith.constant 0 : index
      %c0_58 = arith.constant 0 : index
      %104 = vector.load %arg5[%c0_57, %c0_58] : memref<1x1xf32, #tpu.memory_space<vmem>>, vector<1x1xf32>
      tpu.vector_store %arg5[%c0_57, %c0_58], %103 {strides = array<i32>} : memref<1x1xf32, #tpu.memory_space<vmem>>, vector<1x1xf32>,
    } else {
    }
    %c6 = arith.constant 6 : index
    %37 = memref.load %arg0[%c6] : memref<9xi32, #tpu.memory_space<smem>>
    %c1_i32_30 = arith.constant 1 : i32
    %38 = arith.cmpi eq, %37, %c1_i32_30 : i32
    %39 = arith.extui %38 : i1 to i32
    %cst_31 = arith.constant 1.250000e-01 : f32
    %c0_i32_32 = arith.constant 0 : i32
    %40 = arith.cmpi ne, %39, %c0_i32_32 : i32
    scf.if %40 {
      %57 = vector.extract_strided_slice %6 {offsets = [0, 15], sizes = [32, 241], strides = [1, 1]} : vector<32x256xf32> to vector<32x241xf32>
      %58 = vector.extract_strided_slice %6 {offsets = [0, 0], sizes = [32, 15], strides = [1, 1]} : vector<32x256xf32> to vector<32x15xf32>
      %59 = tpu.concatenate %57, %58 in 1 : vector<32x241xf32>, vector<32x15xf32> -> vector<32x256xf32>
      %60 = arith.mulf %0, %59 : vector<32x256xf32>
      %cst_46 = arith.constant dense<0.000000e+00> : vector<32xf32>
      %61 = vector.multi_reduction <add>, %60, %cst_46 [1] : vector<32x256xf32> to vector<32xf32>
      %62 = vector.shape_cast %61 : vector<32xf32> to vector<32x1xf32>
      %63 = vector.extract_strided_slice %62 {offsets = [0, 0], sizes = [8, 1], strides = [1, 1]} : vector<32x1xf32> to vector<8x1xf32>
      %64 = vector.extract_strided_slice %62 {offsets = [8, 0], sizes = [8, 1], strides = [1, 1]} : vector<32x1xf32> to vector<8x1xf32>
      %65 = vector.extract_strided_slice %62 {offsets = [16, 0], sizes = [8, 1], strides = [1, 1]} : vector<32x1xf32> to vector<8x1xf32>
      %66 = vector.extract_strided_slice %62 {offsets = [24, 0], sizes = [8, 1], strides = [1, 1]} : vector<32x1xf32> to vector<8x1xf32>
      %cst_47 = arith.constant 5.000000e-02 : f32
      %67 = vector.broadcast %cst_47 : f32 to vector<8x1xf32>
      %68 = arith.addf %7, %67 : vector<8x1xf32>
      %cst_48 = arith.constant 5.000000e-02 : f32
      %69 = vector.broadcast %cst_48 : f32 to vector<8x1xf32>
      %70 = arith.subf %8, %69 : vector<8x1xf32>
      %cst_49 = arith.constant -5.000000e-02 : f32
      %71 = vector.broadcast %cst_49 : f32 to vector<8x1xf32>
      %72 = arith.addf %9, %71 : vector<8x1xf32>
      %cst_50 = arith.constant -5.000000e-02 : f32
      %73 = vector.broadcast %cst_50 : f32 to vector<8x1xf32>
      %74 = arith.subf %10, %73 : vector<8x1xf32>
      %75 = arith.addf %68, %70 : vector<8x1xf32>
      %76 = arith.addf %72, %74 : vector<8x1xf32>
      %77 = arith.mulf %75, %76 : vector<8x1xf32>
      %78 = arith.addf %63, %64 : vector<8x1xf32>
      %79 = arith.addf %65, %66 : vector<8x1xf32>
      %80 = arith.mulf %78, %79 : vector<8x1xf32>
      %81 = arith.minimumf %63, %68 : vector<8x1xf32>
      %82 = arith.minimumf %64, %70 : vector<8x1xf32>
      %83 = arith.addf %81, %82 : vector<8x1xf32>
      %84 = arith.minimumf %66, %74 : vector<8x1xf32>
      %85 = arith.minimumf %65, %72 : vector<8x1xf32>
      %86 = arith.addf %84, %85 : vector<8x1xf32>
      %87 = arith.mulf %83, %86 : vector<8x1xf32>
      %88 = arith.addf %77, %80 : vector<8x1xf32>
      %89 = arith.subf %88, %87 : vector<8x1xf32>
      %cst_51 = arith.constant 1.000000e+00 : f32
      %90 = vector.broadcast %cst_51 : f32 to vector<8x1xf32>
      %91 = arith.addf %87, %90 : vector<8x1xf32>
      %cst_52 = arith.constant 1.000000e+00 : f32
      %92 = vector.broadcast %cst_52 : f32 to vector<8x1xf32>
      %93 = arith.addf %89, %92 : vector<8x1xf32>
      %94 = arith.divf %91, %93 : vector<8x1xf32>
      %95 = math.log %94 : vector<8x1xf32>
      %cst_53 = arith.constant 0.000000e+00 : f32
      %96 = vector.broadcast %cst_53 : f32 to vector<8x1xf32>
      %97 = arith.subf %96, %95 : vector<8x1xf32>
      %cst_54 = arith.constant dense<0.000000e+00> : vector<1xf32>
      %98 = vector.multi_reduction <add>, %97, %cst_54 [0] : vector<8x1xf32> to vector<1xf32>
      %99 = vector.shape_cast %98 : vector<1xf32> to vector<1x1xf32>
      %100 = vector.broadcast %cst_31 : f32 to vector<1x1xf32>
      %101 = arith.mulf %99, %100 : vector<1x1xf32>
      %c0_55 = arith.constant 0 : index
      %c0_56 = arith.constant 0 : index
      %102 = vector.load %arg5[%c0_55, %c0_56] : memref<1x1xf32, #tpu.memory_space<vmem>>, vector<1x1xf32>
      %103 = arith.addf %102, %101 : vector<1x1xf32>
      %c0_57 = arith.constant 0 : index
      %c0_58 = arith.constant 0 : index
      %104 = vector.load %arg5[%c0_57, %c0_58] : memref<1x1xf32, #tpu.memory_space<vmem>>, vector<1x1xf32>
      tpu.vector_store %arg5[%c0_57, %c0_58], %103 {strides = array<i32>} : memref<1x1xf32, #tpu.memory_space<vmem>>, vector<1x1xf32>,
    } else {
    }
    %c7 = arith.constant 7 : index
    %41 = memref.load %arg0[%c7] : memref<9xi32, #tpu.memory_space<smem>>
    %c1_i32_33 = arith.constant 1 : i32
    %42 = arith.cmpi eq, %41, %c1_i32_33 : i32
    %43 = arith.extui %42 : i1 to i32
    %cst_34 = arith.constant 1.250000e-01 : f32
    %c0_i32_35 = arith.constant 0 : i32
    %44 = arith.cmpi ne, %43, %c0_i32_35 : i32
    scf.if %44 {
      %57 = vector.extract_strided_slice %6 {offsets = [0, 255], sizes = [32, 1], strides = [1, 1]} : vector<32x256xf32> to vector<32x1xf32>
      %58 = vector.extract_strided_slice %6 {offsets = [0, 0], sizes = [32, 255], strides = [1, 1]} : vector<32x256xf32> to vector<32x255xf32>
      %59 = tpu.concatenate %57, %58 in 1 : vector<32x1xf32>, vector<32x255xf32> -> vector<32x256xf32>
      %60 = arith.mulf %0, %59 : vector<32x256xf32>
      %cst_46 = arith.constant dense<0.000000e+00> : vector<32xf32>
      %61 = vector.multi_reduction <add>, %60, %cst_46 [1] : vector<32x256xf32> to vector<32xf32>
      %62 = vector.shape_cast %61 : vector<32xf32> to vector<32x1xf32>
      %63 = vector.extract_strided_slice %62 {offsets = [0, 0], sizes = [8, 1], strides = [1, 1]} : vector<32x1xf32> to vector<8x1xf32>
      %64 = vector.extract_strided_slice %62 {offsets = [8, 0], sizes = [8, 1], strides = [1, 1]} : vector<32x1xf32> to vector<8x1xf32>
      %65 = vector.extract_strided_slice %62 {offsets = [16, 0], sizes = [8, 1], strides = [1, 1]} : vector<32x1xf32> to vector<8x1xf32>
      %66 = vector.extract_strided_slice %62 {offsets = [24, 0], sizes = [8, 1], strides = [1, 1]} : vector<32x1xf32> to vector<8x1xf32>
      %cst_47 = arith.constant 5.000000e-02 : f32
      %67 = vector.broadcast %cst_47 : f32 to vector<8x1xf32>
      %68 = arith.addf %7, %67 : vector<8x1xf32>
      %cst_48 = arith.constant 5.000000e-02 : f32
      %69 = vector.broadcast %cst_48 : f32 to vector<8x1xf32>
      %70 = arith.subf %8, %69 : vector<8x1xf32>
      %cst_49 = arith.constant 0.000000e+00 : f32
      %71 = vector.broadcast %cst_49 : f32 to vector<8x1xf32>
      %72 = arith.addf %9, %71 : vector<8x1xf32>
      %cst_50 = arith.constant 0.000000e+00 : f32
      %73 = vector.broadcast %cst_50 : f32 to vector<8x1xf32>
      %74 = arith.subf %10, %73 : vector<8x1xf32>
      %75 = arith.addf %68, %70 : vector<8x1xf32>
      %76 = arith.addf %72, %74 : vector<8x1xf32>
      %77 = arith.mulf %75, %76 : vector<8x1xf32>
      %78 = arith.addf %63, %64 : vector<8x1xf32>
      %79 = arith.addf %65, %66 : vector<8x1xf32>
      %80 = arith.mulf %78, %79 : vector<8x1xf32>
      %81 = arith.minimumf %63, %68 : vector<8x1xf32>
      %82 = arith.minimumf %64, %70 : vector<8x1xf32>
      %83 = arith.addf %81, %82 : vector<8x1xf32>
      %84 = arith.minimumf %66, %74 : vector<8x1xf32>
      %85 = arith.minimumf %65, %72 : vector<8x1xf32>
      %86 = arith.addf %84, %85 : vector<8x1xf32>
      %87 = arith.mulf %83, %86 : vector<8x1xf32>
      %88 = arith.addf %77, %80 : vector<8x1xf32>
      %89 = arith.subf %88, %87 : vector<8x1xf32>
      %cst_51 = arith.constant 1.000000e+00 : f32
      %90 = vector.broadcast %cst_51 : f32 to vector<8x1xf32>
      %91 = arith.addf %87, %90 : vector<8x1xf32>
      %cst_52 = arith.constant 1.000000e+00 : f32
      %92 = vector.broadcast %cst_52 : f32 to vector<8x1xf32>
      %93 = arith.addf %89, %92 : vector<8x1xf32>
      %94 = arith.divf %91, %93 : vector<8x1xf32>
      %95 = math.log %94 : vector<8x1xf32>
      %cst_53 = arith.constant 0.000000e+00 : f32
      %96 = vector.broadcast %cst_53 : f32 to vector<8x1xf32>
      %97 = arith.subf %96, %95 : vector<8x1xf32>
      %cst_54 = arith.constant dense<0.000000e+00> : vector<1xf32>
      %98 = vector.multi_reduction <add>, %97, %cst_54 [0] : vector<8x1xf32> to vector<1xf32>
      %99 = vector.shape_cast %98 : vector<1xf32> to vector<1x1xf32>
      %100 = vector.broadcast %cst_34 : f32 to vector<1x1xf32>
      %101 = arith.mulf %99, %100 : vector<1x1xf32>
      %c0_55 = arith.constant 0 : index
      %c0_56 = arith.constant 0 : index
      %102 = vector.load %arg5[%c0_55, %c0_56] : memref<1x1xf32, #tpu.memory_space<vmem>>, vector<1x1xf32>
      %103 = arith.addf %102, %101 : vector<1x1xf32>
      %c0_57 = arith.constant 0 : index
      %c0_58 = arith.constant 0 : index
      %104 = vector.load %arg5[%c0_57, %c0_58] : memref<1x1xf32, #tpu.memory_space<vmem>>, vector<1x1xf32>
      tpu.vector_store %arg5[%c0_57, %c0_58], %103 {strides = array<i32>} : memref<1x1xf32, #tpu.memory_space<vmem>>, vector<1x1xf32>,
    } else {
    }
    %c8 = arith.constant 8 : index
    %45 = memref.load %arg0[%c8] : memref<9xi32, #tpu.memory_space<smem>>
    %c1_i32_36 = arith.constant 1 : i32
    %46 = arith.cmpi eq, %45, %c1_i32_36 : i32
    %47 = arith.extui %46 : i1 to i32
    %cst_37 = arith.constant 1.250000e-01 : f32
    %c0_i32_38 = arith.constant 0 : i32
    %48 = arith.cmpi ne, %47, %c0_i32_38 : i32
    scf.if %48 {
      %57 = vector.extract_strided_slice %6 {offsets = [0, 239], sizes = [32, 17], strides = [1, 1]} : vector<32x256xf32> to vector<32x17xf32>
      %58 = vector.extract_strided_slice %6 {offsets = [0, 0], sizes = [32, 239], strides = [1, 1]} : vector<32x256xf32> to vector<32x239xf32>
      %59 = tpu.concatenate %57, %58 in 1 : vector<32x17xf32>, vector<32x239xf32> -> vector<32x256xf32>
      %60 = arith.mulf %0, %59 : vector<32x256xf32>
      %cst_46 = arith.constant dense<0.000000e+00> : vector<32xf32>
      %61 = vector.multi_reduction <add>, %60, %cst_46 [1] : vector<32x256xf32> to vector<32xf32>
      %62 = vector.shape_cast %61 : vector<32xf32> to vector<32x1xf32>
      %63 = vector.extract_strided_slice %62 {offsets = [0, 0], sizes = [8, 1], strides = [1, 1]} : vector<32x1xf32> to vector<8x1xf32>
      %64 = vector.extract_strided_slice %62 {offsets = [8, 0], sizes = [8, 1], strides = [1, 1]} : vector<32x1xf32> to vector<8x1xf32>
      %65 = vector.extract_strided_slice %62 {offsets = [16, 0], sizes = [8, 1], strides = [1, 1]} : vector<32x1xf32> to vector<8x1xf32>
      %66 = vector.extract_strided_slice %62 {offsets = [24, 0], sizes = [8, 1], strides = [1, 1]} : vector<32x1xf32> to vector<8x1xf32>
      %cst_47 = arith.constant 5.000000e-02 : f32
      %67 = vector.broadcast %cst_47 : f32 to vector<8x1xf32>
      %68 = arith.addf %7, %67 : vector<8x1xf32>
      %cst_48 = arith.constant 5.000000e-02 : f32
      %69 = vector.broadcast %cst_48 : f32 to vector<8x1xf32>
      %70 = arith.subf %8, %69 : vector<8x1xf32>
      %cst_49 = arith.constant 5.000000e-02 : f32
      %71 = vector.broadcast %cst_49 : f32 to vector<8x1xf32>
      %72 = arith.addf %9, %71 : vector<8x1xf32>
      %cst_50 = arith.constant 5.000000e-02 : f32
      %73 = vector.broadcast %cst_50 : f32 to vector<8x1xf32>
      %74 = arith.subf %10, %73 : vector<8x1xf32>
      %75 = arith.addf %68, %70 : vector<8x1xf32>
      %76 = arith.addf %72, %74 : vector<8x1xf32>
      %77 = arith.mulf %75, %76 : vector<8x1xf32>
      %78 = arith.addf %63, %64 : vector<8x1xf32>
      %79 = arith.addf %65, %66 : vector<8x1xf32>
      %80 = arith.mulf %78, %79 : vector<8x1xf32>
      %81 = arith.minimumf %63, %68 : vector<8x1xf32>
      %82 = arith.minimumf %64, %70 : vector<8x1xf32>
      %83 = arith.addf %81, %82 : vector<8x1xf32>
      %84 = arith.minimumf %66, %74 : vector<8x1xf32>
      %85 = arith.minimumf %65, %72 : vector<8x1xf32>
      %86 = arith.addf %84, %85 : vector<8x1xf32>
      %87 = arith.mulf %83, %86 : vector<8x1xf32>
      %88 = arith.addf %77, %80 : vector<8x1xf32>
      %89 = arith.subf %88, %87 : vector<8x1xf32>
      %cst_51 = arith.constant 1.000000e+00 : f32
      %90 = vector.broadcast %cst_51 : f32 to vector<8x1xf32>
      %91 = arith.addf %87, %90 : vector<8x1xf32>
      %cst_52 = arith.constant 1.000000e+00 : f32
      %92 = vector.broadcast %cst_52 : f32 to vector<8x1xf32>
      %93 = arith.addf %89, %92 : vector<8x1xf32>
      %94 = arith.divf %91, %93 : vector<8x1xf32>
      %95 = math.log %94 : vector<8x1xf32>
      %cst_53 = arith.constant 0.000000e+00 : f32
      %96 = vector.broadcast %cst_53 : f32 to vector<8x1xf32>
      %97 = arith.subf %96, %95 : vector<8x1xf32>
      %cst_54 = arith.constant dense<0.000000e+00> : vector<1xf32>
      %98 = vector.multi_reduction <add>, %97, %cst_54 [0] : vector<8x1xf32> to vector<1xf32>
      %99 = vector.shape_cast %98 : vector<1xf32> to vector<1x1xf32>
      %100 = vector.broadcast %cst_37 : f32 to vector<1x1xf32>
      %101 = arith.mulf %99, %100 : vector<1x1xf32>
      %c0_55 = arith.constant 0 : index
      %c0_56 = arith.constant 0 : index
      %102 = vector.load %arg5[%c0_55, %c0_56] : memref<1x1xf32, #tpu.memory_space<vmem>>, vector<1x1xf32>
      %103 = arith.addf %102, %101 : vector<1x1xf32>
      %c0_57 = arith.constant 0 : index
      %c0_58 = arith.constant 0 : index
      %104 = vector.load %arg5[%c0_57, %c0_58] : memref<1x1xf32, #tpu.memory_space<vmem>>, vector<1x1xf32>
      tpu.vector_store %arg5[%c0_57, %c0_58], %103 {strides = array<i32>} : memref<1x1xf32, #tpu.memory_space<vmem>>, vector<1x1xf32>,
    } else {
    }
    %c0_39 = arith.constant 0 : index
    %49 = memref.load %arg1[%c0_39] : memref<1xi32, #tpu.memory_space<smem>>
    %c0_i32_40 = arith.constant 0 : i32
    %50 = arith.cmpi sgt, %49, %c0_i32_40 : i32
    %51 = arith.extui %50 : i1 to i32
    %c0_i32_41 = arith.constant 0 : i32
    %52 = arith.cmpi ne, %51, %c0_i32_41 : i32
    scf.if %52 {
      %c0_46 = arith.constant 0 : index
      %c0_47 = arith.constant 0 : index
      %57 = vector.load %arg5[%c0_46, %c0_47] : memref<1x1xf32, #tpu.memory_space<vmem>>, vector<1x1xf32>
      %c0_48 = arith.constant 0 : index
      %58 = memref.load %arg1[%c0_48] : memref<1xi32, #tpu.memory_space<smem>>
      %59 = arith.sitofp %58 : i32 to f32
      %60 = vector.broadcast %59 : f32 to vector<1x1xf32>
      %61 = arith.divf %57, %60 : vector<1x1xf32>
      %c0_49 = arith.constant 0 : index
      %c0_50 = arith.constant 0 : index
      %62 = vector.load %arg5[%c0_49, %c0_50] : memref<1x1xf32, #tpu.memory_space<vmem>>, vector<1x1xf32>
      tpu.vector_store %arg5[%c0_49, %c0_50], %61 {strides = array<i32>} : memref<1x1xf32, #tpu.memory_space<vmem>>, vector<1x1xf32>,
    } else {
    }
    %c0_42 = arith.constant 0 : index
    %53 = memref.load %arg1[%c0_42] : memref<1xi32, #tpu.memory_space<smem>>
    %c0_i32_43 = arith.constant 0 : i32
    %54 = arith.cmpi eq, %53, %c0_i32_43 : i32
    %55 = arith.extui %54 : i1 to i32
    %cst_44 = arith.constant 1.250000e-01 : f32
    %c0_i32_45 = arith.constant 0 : i32
    %56 = arith.cmpi ne, %55, %c0_i32_45 : i32
    scf.if %56 {
      %57 = arith.mulf %0, %6 : vector<32x256xf32>
      %cst_46 = arith.constant dense<0.000000e+00> : vector<32xf32>
      %58 = vector.multi_reduction <add>, %57, %cst_46 [1] : vector<32x256xf32> to vector<32xf32>
      %59 = vector.shape_cast %58 : vector<32xf32> to vector<32x1xf32>
      %60 = vector.extract_strided_slice %59 {offsets = [0, 0], sizes = [8, 1], strides = [1, 1]} : vector<32x1xf32> to vector<8x1xf32>
      %61 = vector.extract_strided_slice %59 {offsets = [8, 0], sizes = [8, 1], strides = [1, 1]} : vector<32x1xf32> to vector<8x1xf32>
      %62 = vector.extract_strided_slice %59 {offsets = [16, 0], sizes = [8, 1], strides = [1, 1]} : vector<32x1xf32> to vector<8x1xf32>
      %63 = vector.extract_strided_slice %59 {offsets = [24, 0], sizes = [8, 1], strides = [1, 1]} : vector<32x1xf32> to vector<8x1xf32>
      %64 = arith.addf %7, %8 : vector<8x1xf32>
      %65 = arith.addf %9, %10 : vector<8x1xf32>
      %66 = arith.mulf %64, %65 : vector<8x1xf32>
      %67 = arith.addf %60, %61 : vector<8x1xf32>
      %68 = arith.addf %62, %63 : vector<8x1xf32>
      %69 = arith.mulf %67, %68 : vector<8x1xf32>
      %70 = arith.minimumf %60, %7 : vector<8x1xf32>
      %71 = arith.minimumf %61, %8 : vector<8x1xf32>
      %72 = arith.addf %70, %71 : vector<8x1xf32>
      %73 = arith.minimumf %63, %10 : vector<8x1xf32>
      %74 = arith.minimumf %62, %9 : vector<8x1xf32>
      %75 = arith.addf %73, %74 : vector<8x1xf32>
      %76 = arith.mulf %72, %75 : vector<8x1xf32>
      %77 = arith.addf %66, %69 : vector<8x1xf32>
      %78 = arith.subf %77, %76 : vector<8x1xf32>
      %cst_47 = arith.constant 1.000000e+00 : f32
      %79 = vector.broadcast %cst_47 : f32 to vector<8x1xf32>
      %80 = arith.addf %76, %79 : vector<8x1xf32>
      %cst_48 = arith.constant 1.000000e+00 : f32
      %81 = vector.broadcast %cst_48 : f32 to vector<8x1xf32>
      %82 = arith.addf %78, %81 : vector<8x1xf32>
      %83 = arith.divf %80, %82 : vector<8x1xf32>
      %84 = math.log %83 : vector<8x1xf32>
      %cst_49 = arith.constant 0.000000e+00 : f32
      %85 = vector.broadcast %cst_49 : f32 to vector<8x1xf32>
      %86 = arith.subf %85, %84 : vector<8x1xf32>
      %cst_50 = arith.constant dense<0.000000e+00> : vector<1xf32>
      %87 = vector.multi_reduction <add>, %86, %cst_50 [0] : vector<8x1xf32> to vector<1xf32>
      %88 = vector.shape_cast %87 : vector<1xf32> to vector<1x1xf32>
      %89 = vector.broadcast %cst_44 : f32 to vector<1x1xf32>
      %90 = arith.mulf %88, %89 : vector<1x1xf32>
      %c0_51 = arith.constant 0 : index
      %c0_52 = arith.constant 0 : index
      %91 = vector.load %arg5[%c0_51, %c0_52] : memref<1x1xf32, #tpu.memory_space<vmem>>, vector<1x1xf32>
      tpu.vector_store %arg5[%c0_51, %c0_52], %90 {strides = array<i32>} : memref<1x1xf32, #tpu.memory_space<vmem>>, vector<1x1xf32>,
    } else {
    }
    return
  }
}

</mosaic_0001>

<bundles_post_ra>
// kernel: tpu_custom_call.1
= control target key start
LH: loop header
LB: loop body
LE: loop exit
PB: predicated region body
PF: predicated region fallthrough
CT: control target
= control target key end

     0   :  { %s2297_s0 = inlined_call_operand.vmem [shape: s32[9], index: 0, kind: input, shape index: {}]   ;;  %s2298_s1 = inlined_call_operand.<no memory space> [shape: s32[1], index: 1, kind: input, shape index: {}]   ;;  %s2299_s2 = inlined_call_operand.vmem [shape: s32[32,1], index: 2, kind: input, shape index: {}]   ;;  %s2300_s3 = inlined_call_operand.hbm [shape: f32[32,256], index: 3, kind: input, shape index: {}]   ;;  %s2301_s4 = inlined_call_operand.vmem [shape: f32[8,4], index: 4, kind: input, shape index: {}]   ;;  %s2302_s5 = inlined_call_operand.hbm [shape: f32[1,1], index: 5, kind: output, shape index: {}]  }
   0x1   :  { %10 = sst [smem:[#allocation2]] %s2298_s1 }
   0x2   :  { %11 = vsyncpa [#allocation6], 0 }
   0x3   :  { %12 = vsyncpa [#allocation4], 0 }
   0x4   :  { %13 = vsyncpa [#allocation5], 0  ;;  %s19_s22 = sshll.u32 %s2297_s0, 4  ;;  %s31_s25 = sshll.u32 %s2300_s3, 4  ;;  %s20_s22 = int_to_ptr.vmem [resolvable:$true] %s19_s22  ;;  %s32_s25 = int_to_ptr.hbm [resolvable:$true] %s31_s25 }
   0x5   :  { %s1830_s26 = smov [#allocation3]   ;;  %s1831_s27 = smov [#allocation7]  }
   0x6   :  { %22 = dma.vmem_to_smem %s20_s22, 16, %s1830_s26, [#allocation6]  }
   0x7   :  { %s33_s28 = sshll.u32 %s1831_s27, 4  ;;  %s1832_s29 = smov 256   ;;  %s34_s28 = int_to_ptr.vmem [resolvable:$true] %s33_s28 }
   0x8   :  { %s1833_s1 = smov 16  }
   0x9   :  { %39 = dma.hbm_to_vmem [thread:$0]  %s32_s25, 1024, %s34_s28, [#allocation4], %s1832_s29, %s1832_s29, %s1833_s1  }
   0xa   :  { %1824 = dma.done.wait [#allocation6], 16  }
   0xb   :  { %1825 = vsyncadd [#allocation6], 4294967280 }
   0xc   :  { %1826 = dma.done.wait [#allocation4], 1024  }
   0xd   :  { %1827 = vsyncadd [#allocation4], 4294966272 }
   0xe   :  { %50 = sfence }
   0xf   :  { %v61_v0 = vld [vmem:[%s2299_s2 + $0x10] sm:$0xff]  ;;  %v59_v1 = vld [vmem:[%s2299_s2] sm:$0xff]  ;;  %vm103_vm0 = vcmask 0   ;;  %v1834_v2 = vmov 0   ;;  %v1835_v3 = vmov 0.0   ;;  %s1929_s7 = sld [smem:[#allocation3]]  ;;  %v63_v15 = vlaneseq }
  0x10   :  { %1561 = vset.pattern.permute.xlu1 %v1834_v2  ;;  %1560 = vset.pattern.permute.xlu0 %v1834_v2  ;;  %104 = vst.msk [vmem:[#allocation8] sm:$0x1] %vm103_vm0, %v1835_v3  ;;  %v62_v4 = vld [vmem:[%s2299_s2 + $0x18] sm:$0xff]  ;;  %v60_v5 = vld [vmem:[%s2299_s2 + $0x8] sm:$0xff]  ;;  %v1937_v6 = vld [vmem:[#allocation7] sm:$0xff] }
  0x11   :  { %73 = vperm.xlu1 %1561, %v61_v0   ;;  %67 = vperm.xlu0 %1560, %v59_v1   ;;  %v1939_v7 = vld [vmem:[#allocation7 + $0x8] sm:$0xff]  ;;  %v1941_v8 = vld [vmem:[#allocation7 + $0x10] sm:$0xff]  ;;  %v1943_v9 = vld [vmem:[#allocation7 + $0x18] sm:$0xff]  ;;  %v64_v16 = vand.u32 127, %v63_v15 }
  0x12   :  { %v1945_v10 = vld [vmem:[#allocation7 + $0x20] sm:$0xff]  ;;  %v1947_v11 = vld [vmem:[#allocation7 + $0x28] sm:$0xff]  ;;  %v1949_v12 = vld [vmem:[#allocation7 + $0x30] sm:$0xff] }
  0x13   :  { %v1951_v13 = vld [vmem:[#allocation7 + $0x38] sm:$0xff]  ;;  %v1956_v14 = vld [vmem:[%s2301_s4] sm:$0xff]  ;;  %v65_v17 = vadd.s32 128, %v64_v16 }
  0x15   :  { %p1478_p0 = scmp.ne.s32.totalorder %s1929_s7, 1 }
  0x16   :  { %s1836_s4 = smov (!%p1478_p0), 111   ;;  %s1837_s13 = smov (!%p1478_p0), 127  }
  0x17   :  { %s1838_s14 = smov (!%p1478_p0), 1   ;;  %s1839_s15 = smov (!%p1478_p0), 126  }
  0x18   :  { %s1840_s16 = smov (!%p1478_p0), 125  }
  0x19   :  { %76 = vperm.xlu1 %1561, %v62_v4   ;;  %70 = vperm.xlu0 %1560, %v60_v5  }
  0x83   :  { %v74_v18 = vpop.permute.xlu1 %73  ;;  %v68_v19 = vpop.permute.xlu0 %67 }
  0x84   :  { %vm82_vm1 = vcmp.eq.s32.totalorder %v64_v16, %v74_v18  ;;  %vm83_vm2 = vcmp.eq.s32.totalorder %v65_v17, %v74_v18  ;;  %vm78_vm3 = vcmp.eq.s32.totalorder %v64_v16, %v68_v19  ;;  %vm79_vm4 = vcmp.eq.s32.totalorder %v65_v17, %v68_v19 }
  0x85   :  { %v1958_v20 = vsel %vm82_vm1, 1.0, %v1835_v3  ;;  %v1960_v21 = vsel %vm83_vm2, 1.0, %v1835_v3  ;;  %v1962_v22 = vsel %vm78_vm3, 1.0, %v1835_v3  ;;  %v1964_v23 = vsel %vm79_vm4, 1.0, %v1835_v3 }
  0x89   :  { %109 = sbr.rel (%p1478_p0) target bundleno = 670 (0x29e), region = 33 }
  0x8b   :  { %v77_v24 = vpop.permute.xlu1 %76  ;;  %v71_v25 = vpop.permute.xlu0 %70 }
  0x8c   :  { %vm84_vm5 = vcmp.eq.s32.totalorder %v64_v16, %v77_v24  ;;  %vm85_vm6 = vcmp.eq.s32.totalorder %v65_v17, %v77_v24  ;;  %vm80_vm7 = vcmp.eq.s32.totalorder %v64_v16, %v71_v25  ;;  %vm81_vm8 = vcmp.eq.s32.totalorder %v65_v17, %v71_v25 }
  0x8d   :  { %v1966_v26 = vsel %vm84_vm5, 1.0, %v1835_v3  ;;  %v1968_v27 = vsel %vm85_vm6, 1.0, %v1835_v3  ;;  %v1970_v28 = vsel %vm80_vm7, 1.0, %v1835_v3  ;;  %v1972_v29 = vsel %vm81_vm8, 1.0, %v1835_v3 }
  0x8e   :  { %v1572_v30 = vpack.i.bf16 %v1968_v27, %v1966_v26  ;;  %v1562_v31 = vpack.i.bf16 %v1960_v21, %v1958_v20  ;;  %v1577_v32 = vpack.i.bf16 %v1964_v23, %v1962_v22  ;;  %v1567_v33 = vpack.i.bf16 %v1972_v29, %v1970_v28 }
  0x8f   :  { %vm134_vm9 = vcmask 908288   ;;  %v1479_v2 = vadd.f32 0.05, %v1956_v14  ;;  %v175_v3 = vadd.f32 -0.05, %v1956_v14  ;;  %vm231_vm14 = vcmask 7168  }
  0x90   :  { %1573 = vrot.lane.b32.xlu1 %v1572_v30, %s1836_s4  ;;  %1563 = vrot.lane.b32.xlu0 %v1562_v31, %s1836_s4 }
  0x91   :  { %1578 = vrot.lane.b32.xlu2 %v1577_v32, %s1836_s4 }
  0x98   :  { %1568 = vrot.lane.b32.xlu0 %v1567_v33, %s1836_s4 }
  0xeb   :  { %v1579_v34 = vpop.permute.xlu2 %1578 }
  0xec   :  { %v1581_v37 = vunpack.i.h.bf16 %v1579_v34  ;;  %v1580_v38 = vunpack.i.l.bf16 %v1579_v34 }
  0xee   :  { %v135_v51 = vsel %vm134_vm9, %v1580_v38, %v1581_v37  ;;  %v151_v52 = vsel %vm134_vm9, %v1581_v37, %v1580_v38 }
  0xef   :  { %v155_v56 = vmul.f32 %v135_v51, %v1937_v6  ;;  %v156_v57 = vmul.f32 %v151_v52, %v1939_v7 }
  0xf1   :  { %v163_v62 = vadd.f32 %v156_v57, %v155_v56 }
 0x102   :  { %v1574_v35 = vpop.permute.xlu1 %1573  ;;  %v1564_v36 = vpop.permute.xlu0 %1563 }
 0x103   :  { %v1576_v39 = vunpack.i.h.bf16 %v1574_v35  ;;  %v1575_v40 = vunpack.i.l.bf16 %v1574_v35  ;;  %v1566_v41 = vunpack.i.h.bf16 %v1564_v36  ;;  %v1565_v42 = vunpack.i.l.bf16 %v1564_v36 }
 0x105   :  { %v138_v43 = vsel %vm134_vm9, %v1575_v40, %v1576_v39  ;;  %v154_v44 = vsel %vm134_vm9, %v1576_v39, %v1575_v40  ;;  %v137_v45 = vsel %vm134_vm9, %v1565_v42, %v1566_v41  ;;  %v153_v46 = vsel %vm134_vm9, %v1566_v41, %v1565_v42 }
 0x106   :  { %v161_v47 = vmul.f32 %v138_v43, %v1949_v12  ;;  %v162_v48 = vmul.f32 %v154_v44, %v1951_v13  ;;  %v159_v49 = vmul.f32 %v137_v45, %v1945_v10  ;;  %v160_v50 = vmul.f32 %v153_v46, %v1947_v11 }
 0x108   :  { %v172_v53 = vadd.f32 %v162_v48, %v161_v47  ;;  %v169_v54 = vadd.f32 %v160_v50, %v159_v49 }
 0x10a   :  { %173 = vadd.xlane.f32.xlu0 %v172_v53  ;;  %v1569_v55 = vpop.permute.xlu0 %1568  ;;  %170 = vadd.xlane.f32.xlu1 %v169_v54 }
 0x10b   :  { %v1571_v58 = vunpack.i.h.bf16 %v1569_v55  ;;  %v1570_v59 = vunpack.i.l.bf16 %v1569_v55 }
 0x10d   :  { %v136_v60 = vsel %vm134_vm9, %v1570_v59, %v1571_v58  ;;  %v152_v61 = vsel %vm134_vm9, %v1571_v58, %v1570_v59 }
 0x10e   :  { %v157_v63 = vmul.f32 %v136_v60, %v1941_v8  ;;  %v158_v0 = vmul.f32 %v152_v61, %v1943_v9 }
 0x110   :  { %v166_v1 = vadd.f32 %v158_v0, %v157_v63 }
 0x112   :  { %164 = vadd.xlane.f32.xlu0 %v163_v62  ;;  %167 = vadd.xlane.f32.xlu2 %v166_v1 }
 0x12a   :  { %178 = vrot.lane.b32.xlu2 %v1479_v2, %s1837_s13 }
 0x17d   :  { %v174_v4 = vpop.xlane.xlu0 %173  ;;  %v171_v5 = vpop.xlane.xlu1 %170 }
 0x17e   :  { %v198_v15 = vmin.f32 %v171_v5, %v175_v3  ;;  %v188_v18 = vadd.f32 %v174_v4, %v171_v5  ;;  %v197_v32 = vmin.f32 %v174_v4, %v1479_v2 }
 0x180   :  { %200 = vrot.lane.b32.xlu1 %v198_v15, %s1838_s14 }
 0x185   :  { %v165_v16 = vpop.xlane.xlu0 %164  ;;  %v168_v17 = vpop.xlane.xlu2 %167 }
 0x186   :  { %v187_v19 = vadd.f32 %v168_v17, %v165_v16  ;;  %v191_v24 = vmin.f32 %v168_v17, %v1479_v2  ;;  %v190_v36 = vmin.f32 %v165_v16, %v175_v3 }
 0x188   :  { %v189_v25 = vmul.f32 %v188_v18, %v187_v19  ;;  %193 = vrot.lane.b32.xlu2 %v191_v24, %s1837_s13 }
 0x18d   :  { %v179_v30 = vpop.permute.xlu2 %178 }
 0x18e   :  { %v181_v31 = vadd.f32 %v179_v30, %v175_v3  ;;  %v240_v3 = vld [vmem:[#allocation8] sm:$0x1] }
 0x190   :  { %183 = vrot.lane.b32.xlu0 %v181_v31, %s1839_s15 }
 0x1e2   :  { %v194_v37 = vpop.permute.xlu2 %193 }
 0x1e3   :  { %v196_v39 = vadd.f32 %v194_v37, %v190_v36 }
 0x1f2   :  { %v201_v33 = vpop.permute.xlu1 %200 }
 0x1f3   :  { %v203_v34 = vadd.f32 %v201_v33, %v197_v32 }
 0x1f5   :  { %205 = vrot.lane.b32.xlu1 %v203_v34, %s1840_s16 }
 0x202   :  { %v184_v35 = vpop.permute.xlu0 %183 }
 0x203   :  { %v186_v38 = vmul.f32 %v184_v35, %v181_v31 }
 0x205   :  { %v209_v41 = vadd.f32 %v189_v25, %v186_v38 }
 0x267   :  { %v206_v40 = vpop.permute.xlu1 %205 }
 0x268   :  { %v208_v42 = vmul.f32 %v206_v40, %v196_v39 }
 0x26a   :  { %v210_v43 = vsub.f32 %v209_v41, %v208_v42  ;;  %v211_v53 = vadd.f32 1.0, %v208_v42 }
 0x26c   :  { %v212_v44 = vadd.f32 1.0, %v210_v43 }
 0x26e   :  { %1582 = vrcp.f32 %v212_v44  ;;  %v224_v48 = vand.u32 2147483648, %v212_v44  ;;  %v222_v50 = vand.u32 2147483647, %v212_v44  ;;  %vm218_vm11 = vweird.f32 %v212_v44 }
 0x270   :  { %v225_v52 = vor.u32 1.1754944e-38, %v224_v48  ;;  %vm223_vm13 = vcmp.eq.f32.partialorder %v222_v50, 8.507059e+37 }
 0x274   :  { %v1583_v45 = vpop.eup %1582 }
 0x275   :  { %v214_v46 = vmul.f32 %v1583_v45, %v212_v44  ;;  %vm219_vm10 = vweird.f32 %v1583_v45 }
 0x276   :  { %vm220_vm12 = vmor %vm218_vm11, %vm219_vm10 }
 0x277   :  { %v215_v47 = vsub.f32 1.0, %v214_v46 }
 0x279   :  { %v216_v49 = vmul.f32 %v1583_v45, %v215_v47 }
 0x27b   :  { %v217_v51 = vadd.f32 %v1583_v45, %v216_v49 }
 0x27d   :  { %v221_v54 = vsel %vm220_vm12, %v1583_v45, %v217_v51 }
 0x27e   :  { %v226_v55 = vsel %vm223_vm13, %v225_v52, %v221_v54 }
 0x27f   :  { %v227_v56 = vmul.f32 %v226_v55, %v211_v53 }
 0x281   :  { %1584 = vlog2.f32 %v227_v56 }
 0x287   :  { %v1585_v57 = vpop.eup %1584 }
 0x288   :  { %v229_v58 = vmul.f32 0.6931472, %v1585_v57 }
 0x28a   :  { %v230_v59 = vsub.f32 0.0, %v229_v58 }
 0x28c   :  { %v232_v60 = vsel %vm231_vm14, %v230_v59, 0.0 }
 0x28d   :  { %v233_v61 = vrot.slane %v232_v60, 4 }
 0x28f   :  { %v234_v62 = vadd.f32 %v233_v61, %v232_v60 }
 0x291   :  { %v235_v63 = vrot.slane %v234_v62, 2 }
 0x293   :  { %v236_v0 = vadd.f32 %v235_v63, %v234_v62 }
 0x295   :  { %v237_v1 = vrot.slane %v236_v0, 1 }
 0x297   :  { %v238_v2 = vadd.f32 %v237_v1, %v236_v0 }
 0x299   :  { %v239_v4 = vmul.f32 0.125, %v238_v2 }
 0x29b   :  { %v241_v5 = vadd.f32 %v240_v3, %v239_v4 }
 0x29d   :  { %242 = vst.msk [vmem:[#allocation8] sm:$0x1] %vm103_vm0, %v241_v5 }
 0x29e PF:  { %s1480_s17 = sld [smem:[#allocation3 + $0x1]] }
 0x2a4   :  { %p1481_p1 = scmp.ne.s32.totalorder %s1480_s17, 1 }
 0x2a5   :  { %s1841_s18 = smov (!%p1481_p1), 127   ;;  %s1842_s19 = smov (!%p1481_p1), 126  }
 0x2a6   :  { %247 = sbr.rel (%p1481_p1) target bundleno = 1187 (0x4a3), region = 37  ;;  %s1843_s20 = smov (!%p1481_p1), 1  }
 0x2a7   :  { %s1844_s21 = smov (!%p1481_p1), 125  }
 0x2ab   :  { %v1596_v15 = vpack.i.bf16 %v1968_v27, %v1966_v26  ;;  %v1586_v16 = vpack.i.bf16 %v1960_v21, %v1958_v20  ;;  %v1601_v17 = vpack.i.bf16 %v1964_v23, %v1962_v22  ;;  %v1591_v18 = vpack.i.bf16 %v1972_v29, %v1970_v28 }
 0x2ac   :  { %vm272_vm15 = vcmask 1039360   ;;  %v1482_v59 = vadd.f32 0.05, %v1956_v14  ;;  %vm375_vm5 = vcmask 7168  }
 0x2ad   :  { %1597 = vrot.lane.b32.xlu1 %v1596_v15, %s1841_s18  ;;  %1587 = vrot.lane.b32.xlu0 %v1586_v16, %s1841_s18 }
 0x2ae   :  { %1602 = vrot.lane.b32.xlu2 %v1601_v17, %s1841_s18 }
 0x2b5   :  { %1592 = vrot.lane.b32.xlu0 %v1591_v18, %s1841_s18 }
 0x2b6   :  { %322 = vrot.lane.b32.xlu2 %v1956_v14, %s1841_s18 }
 0x308   :  { %v1603_v19 = vpop.permute.xlu2 %1602 }
 0x309   :  { %v1605_v30 = vunpack.i.h.bf16 %v1603_v19  ;;  %v1604_v31 = vunpack.i.l.bf16 %v1603_v19  ;;  %v313_v19 = vadd.f32 -0.05, %v1956_v14 }
 0x30b   :  { %v273_v44 = vsel %vm272_vm15, %v1604_v31, %v1605_v30  ;;  %v289_v45 = vsel %vm272_vm15, %v1605_v30, %v1604_v31 }
 0x30c   :  { %v293_v49 = vmul.f32 %v273_v44, %v1937_v6  ;;  %v294_v50 = vmul.f32 %v289_v45, %v1939_v7 }
 0x30e   :  { %v301_v55 = vadd.f32 %v294_v50, %v293_v49 }
 0x310   :  { %v323_v60 = vpop.permute.xlu2 %322 }
 0x311   :  { %v325_v61 = vadd.f32 %v323_v60, %v1956_v14 }
 0x31f   :  { %v1598_v24 = vpop.permute.xlu1 %1597  ;;  %v1588_v25 = vpop.permute.xlu0 %1587 }
 0x320   :  { %v1600_v32 = vunpack.i.h.bf16 %v1598_v24  ;;  %v1599_v33 = vunpack.i.l.bf16 %v1598_v24  ;;  %v1590_v34 = vunpack.i.h.bf16 %v1588_v25  ;;  %v1589_v35 = vunpack.i.l.bf16 %v1588_v25 }
 0x322   :  { %v276_v36 = vsel %vm272_vm15, %v1599_v33, %v1600_v32  ;;  %v292_v37 = vsel %vm272_vm15, %v1600_v32, %v1599_v33  ;;  %v275_v38 = vsel %vm272_vm15, %v1589_v35, %v1590_v34  ;;  %v291_v39 = vsel %vm272_vm15, %v1590_v34, %v1589_v35 }
 0x323   :  { %v299_v40 = vmul.f32 %v276_v36, %v1949_v12  ;;  %v300_v41 = vmul.f32 %v292_v37, %v1951_v13  ;;  %v297_v42 = vmul.f32 %v275_v38, %v1945_v10  ;;  %v298_v43 = vmul.f32 %v291_v39, %v1947_v11 }
 0x325   :  { %v310_v46 = vadd.f32 %v300_v41, %v299_v40  ;;  %v307_v47 = vadd.f32 %v298_v43, %v297_v42 }
 0x327   :  { %311 = vadd.xlane.f32.xlu0 %v310_v46  ;;  %v1593_v48 = vpop.permute.xlu0 %1592  ;;  %308 = vadd.xlane.f32.xlu1 %v307_v47 }
 0x328   :  { %v1595_v51 = vunpack.i.h.bf16 %v1593_v48  ;;  %v1594_v52 = vunpack.i.l.bf16 %v1593_v48 }
 0x32a   :  { %v274_v53 = vsel %vm272_vm15, %v1594_v52, %v1595_v51  ;;  %v290_v54 = vsel %vm272_vm15, %v1595_v51, %v1594_v52 }
 0x32b   :  { %v295_v56 = vmul.f32 %v274_v53, %v1941_v8  ;;  %v296_v57 = vmul.f32 %v290_v54, %v1943_v9 }
 0x32d   :  { %v304_v58 = vadd.f32 %v296_v57, %v295_v56 }
 0x32f   :  { %302 = vadd.xlane.f32.xlu0 %v301_v55  ;;  %305 = vadd.xlane.f32.xlu2 %v304_v58 }
 0x343   :  { %317 = vrot.lane.b32.xlu0 %v1482_v59, %s1841_s18 }
 0x347   :  { %327 = vrot.lane.b32.xlu2 %v325_v61, %s1842_s19 }
 0x39a   :  { %v312_v62 = vpop.xlane.xlu0 %311  ;;  %v309_v63 = vpop.xlane.xlu1 %308 }
 0x39b   :  { %v342_v0 = vmin.f32 %v309_v63, %v1956_v14  ;;  %v332_v3 = vadd.f32 %v312_v62, %v309_v63  ;;  %v341_v16 = vmin.f32 %v312_v62, %v1956_v14  ;;  %v384_v62 = vld [vmem:[#allocation8] sm:$0x1] }
 0x39d   :  { %344 = vrot.lane.b32.xlu1 %v342_v0, %s1843_s20 }
 0x3a2   :  { %v303_v1 = vpop.xlane.xlu0 %302  ;;  %v306_v2 = vpop.xlane.xlu2 %305 }
 0x3a3   :  { %v331_v4 = vadd.f32 %v306_v2, %v303_v1  ;;  %v335_v5 = vmin.f32 %v306_v2, %v1482_v59  ;;  %v334_v31 = vmin.f32 %v303_v1, %v313_v19 }
 0x3a5   :  { %v333_v15 = vmul.f32 %v332_v3, %v331_v4  ;;  %337 = vrot.lane.b32.xlu1 %v335_v5, %s1841_s18 }
 0x3aa   :  { %v328_v25 = vpop.permute.xlu2 %327 }
 0x3b5   :  { %v318_v24 = vpop.permute.xlu0 %317 }
 0x3b6   :  { %v320_v30 = vadd.f32 %v318_v24, %v313_v19 }
 0x3b8   :  { %v330_v33 = vmul.f32 %v328_v25, %v320_v30 }
 0x3ba   :  { %v353_v36 = vadd.f32 %v333_v15, %v330_v33 }
 0x40f   :  { %v345_v17 = vpop.permute.xlu1 %344 }
 0x410   :  { %v347_v18 = vadd.f32 %v345_v17, %v341_v16 }
 0x412   :  { %349 = vrot.lane.b32.xlu2 %v347_v18, %s1844_s21 }
 0x417   :  { %v338_v32 = vpop.permute.xlu1 %337 }
 0x418   :  { %v340_v34 = vadd.f32 %v338_v32, %v334_v31 }
 0x46c   :  { %v350_v35 = vpop.permute.xlu2 %349 }
 0x46d   :  { %v352_v37 = vmul.f32 %v350_v35, %v340_v34 }
 0x46f   :  { %v354_v38 = vsub.f32 %v353_v36, %v352_v37  ;;  %v355_v48 = vadd.f32 1.0, %v352_v37 }
 0x471   :  { %v356_v39 = vadd.f32 1.0, %v354_v38 }
 0x473   :  { %1606 = vrcp.f32 %v356_v39  ;;  %v368_v43 = vand.u32 2147483648, %v356_v39  ;;  %v366_v45 = vand.u32 2147483647, %v356_v39  ;;  %vm362_vm2 = vweird.f32 %v356_v39 }
 0x475   :  { %v369_v47 = vor.u32 1.1754944e-38, %v368_v43  ;;  %vm367_vm4 = vcmp.eq.f32.partialorder %v366_v45, 8.507059e+37 }
 0x479   :  { %v1607_v40 = vpop.eup %1606 }
 0x47a   :  { %v358_v41 = vmul.f32 %v1607_v40, %v356_v39  ;;  %vm363_vm1 = vweird.f32 %v1607_v40 }
 0x47b   :  { %vm364_vm3 = vmor %vm362_vm2, %vm363_vm1 }
 0x47c   :  { %v359_v42 = vsub.f32 1.0, %v358_v41 }
 0x47e   :  { %v360_v44 = vmul.f32 %v1607_v40, %v359_v42 }
 0x480   :  { %v361_v46 = vadd.f32 %v1607_v40, %v360_v44 }
 0x482   :  { %v365_v49 = vsel %vm364_vm3, %v1607_v40, %v361_v46 }
 0x483   :  { %v370_v50 = vsel %vm367_vm4, %v369_v47, %v365_v49 }
 0x484   :  { %v371_v51 = vmul.f32 %v370_v50, %v355_v48 }
 0x486   :  { %1608 = vlog2.f32 %v371_v51 }
 0x48c   :  { %v1609_v52 = vpop.eup %1608 }
 0x48d   :  { %v373_v53 = vmul.f32 0.6931472, %v1609_v52 }
 0x48f   :  { %v374_v54 = vsub.f32 0.0, %v373_v53 }
 0x491   :  { %v376_v55 = vsel %vm375_vm5, %v374_v54, 0.0 }
 0x492   :  { %v377_v56 = vrot.slane %v376_v55, 4 }
 0x494   :  { %v378_v57 = vadd.f32 %v377_v56, %v376_v55 }
 0x496   :  { %v379_v58 = vrot.slane %v378_v57, 2 }
 0x498   :  { %v380_v59 = vadd.f32 %v379_v58, %v378_v57 }
 0x49a   :  { %v381_v60 = vrot.slane %v380_v59, 1 }
 0x49c   :  { %v382_v61 = vadd.f32 %v381_v60, %v380_v59 }
 0x49e   :  { %v383_v63 = vmul.f32 0.125, %v382_v61 }
 0x4a0   :  { %v385_v0 = vadd.f32 %v384_v62, %v383_v63 }
 0x4a2   :  { %386 = vst.msk [vmem:[#allocation8] sm:$0x1] %vm103_vm0, %v385_v0 }
 0x4a3 PF:  { %s1483_s22 = sld [smem:[#allocation3 + $0x2]] }
 0x4a9   :  { %p1484_p2 = scmp.ne.s32.totalorder %s1483_s22, 1 }
 0x4aa   :  { %s1845_s23 = smov (!%p1484_p2), 15   ;;  %s1846_s24 = smov (!%p1484_p2), 127  }
 0x4ab   :  { %391 = sbr.rel (%p1484_p2) target bundleno = 1704 (0x6a8), region = 41  ;;  %s1847_s25 = smov (!%p1484_p2), 126  }
 0x4ac   :  { %s1848_s26 = smov (!%p1484_p2), 1   ;;  %s1849_s27 = smov (!%p1484_p2), 125  }
 0x4b0   :  { %v1610_v1 = vpack.i.bf16 %v1958_v20, %v1960_v21  ;;  %v1620_v2 = vpack.i.bf16 %v1966_v26, %v1970_v28  ;;  %v1625_v3 = vpack.i.bf16 %v1962_v22, %v1964_v23  ;;  %v1615_v4 = vpack.i.bf16 %v1968_v27, %v1972_v29 }
 0x4b1   :  { %v2049_v5 = vadd.f32 -0.05, %v1956_v14  ;;  %vm420_vm6 = vcmask 121856   ;;  %v1485_v56 = vadd.f32 0.05, %v1956_v14  ;;  %vm520_vm11 = vcmask 7168  }
 0x4b2   :  { %1611 = vrot.lane.b32.xlu0 %v1610_v1, %s1845_s23  ;;  %1621 = vrot.lane.b32.xlu1 %v1620_v2, %s1845_s23 }
 0x4b3   :  { %1626 = vrot.lane.b32.xlu2 %v1625_v3, %s1845_s23 }
 0x4ba   :  { %1616 = vrot.lane.b32.xlu0 %v1615_v4, %s1845_s23 }
 0x4bb   :  { %467 = vrot.lane.b32.xlu2 %v2049_v5, %s1846_s24 }
 0x50d   :  { %v1627_v32 = vpop.permute.xlu2 %1626 }
 0x50e   :  { %v1629_v38 = vunpack.i.h.bf16 %v1627_v32  ;;  %v1628_v39 = vunpack.i.l.bf16 %v1627_v32 }
 0x510   :  { %v421_v48 = vsel %vm420_vm6, %v1629_v38, %v1628_v39  ;;  %v433_v49 = vsel %vm420_vm6, %v1628_v39, %v1629_v38 }
 0x511   :  { %v437_v52 = vmul.f32 %v433_v49, %v1937_v6  ;;  %v438_v53 = vmul.f32 %v421_v48, %v1939_v7 }
 0x513   :  { %v445_v54 = vadd.f32 %v438_v53, %v437_v52 }
 0x515   :  { %v468_v55 = vpop.permute.xlu2 %467 }
 0x516   :  { %v470_v57 = vadd.f32 %v1485_v56, %v468_v55 }
 0x524   :  { %v1612_v15 = vpop.permute.xlu0 %1611  ;;  %v1622_v24 = vpop.permute.xlu1 %1621 }
 0x525   :  { %v1614_v16 = vunpack.i.h.bf16 %v1612_v15  ;;  %v1613_v17 = vunpack.i.l.bf16 %v1612_v15  ;;  %v1624_v33 = vunpack.i.h.bf16 %v1622_v24  ;;  %v1623_v34 = vunpack.i.l.bf16 %v1622_v24 }
 0x527   :  { %v423_v18 = vsel %vm420_vm6, %v1614_v16, %v1613_v17  ;;  %v435_v19 = vsel %vm420_vm6, %v1613_v17, %v1614_v16 }
 0x528   :  { %v441_v25 = vmul.f32 %v435_v19, %v1945_v10  ;;  %v442_v30 = vmul.f32 %v423_v18, %v1947_v11 }
 0x52a   :  { %v451_v31 = vadd.f32 %v442_v30, %v441_v25 }
 0x52c   :  { %v1617_v35 = vpop.permute.xlu0 %1616  ;;  %452 = vadd.xlane.f32.xlu1 %v451_v31 }
 0x52d   :  { %v1619_v36 = vunpack.i.h.bf16 %v1617_v35  ;;  %v1618_v37 = vunpack.i.l.bf16 %v1617_v35 }
 0x52f   :  { %v424_v40 = vsel %vm420_vm6, %v1624_v33, %v1619_v36  ;;  %v436_v41 = vsel %vm420_vm6, %v1619_v36, %v1624_v33  ;;  %v422_v42 = vsel %vm420_vm6, %v1623_v34, %v1618_v37  ;;  %v434_v43 = vsel %vm420_vm6, %v1618_v37, %v1623_v34 }
 0x530   :  { %v443_v44 = vmul.f32 %v436_v41, %v1949_v12  ;;  %v444_v45 = vmul.f32 %v424_v40, %v1951_v13  ;;  %v439_v46 = vmul.f32 %v434_v43, %v1941_v8  ;;  %v440_v47 = vmul.f32 %v422_v42, %v1943_v9 }
 0x532   :  { %v454_v50 = vadd.f32 %v444_v45, %v443_v44  ;;  %v448_v51 = vadd.f32 %v440_v47, %v439_v46 }
 0x534   :  { %455 = vadd.xlane.f32.xlu0 %v454_v50  ;;  %449 = vadd.xlane.f32.xlu2 %v448_v51 }
 0x53c   :  { %446 = vadd.xlane.f32.xlu0 %v445_v54 }
 0x54c   :  { %472 = vrot.lane.b32.xlu2 %v470_v57, %s1847_s25  ;;  %v529_v57 = vld [vmem:[#allocation8] sm:$0x1] }
 0x550   :  { %462 = vrot.lane.b32.xlu0 %v1485_v56, %s1846_s24 }
 0x59f   :  { %v453_v58 = vpop.xlane.xlu1 %452 }
 0x5a0   :  { %v487_v59 = vmin.f32 %v453_v58, %v1485_v56 }
 0x5a2   :  { %489 = vrot.lane.b32.xlu1 %v487_v59, %s1848_s26 }
 0x5a7   :  { %v456_v60 = vpop.xlane.xlu0 %455  ;;  %v450_v61 = vpop.xlane.xlu2 %449 }
 0x5a8   :  { %v480_v62 = vmin.f32 %v450_v61, %v1485_v56  ;;  %v477_v0 = vadd.f32 %v456_v60, %v453_v58  ;;  %v486_v3 = vmin.f32 %v456_v60, %v2049_v5 }
 0x5aa   :  { %482 = vrot.lane.b32.xlu1 %v480_v62, %s1846_s24 }
 0x5af   :  { %v447_v63 = vpop.xlane.xlu0 %446  ;;  %v473_v17 = vpop.permute.xlu2 %472 }
 0x5b0   :  { %v476_v1 = vadd.f32 %v450_v61, %v447_v63  ;;  %v479_v19 = vmin.f32 %v447_v63, %v2049_v5 }
 0x5b2   :  { %v478_v2 = vmul.f32 %v477_v0, %v476_v1 }
 0x5c2   :  { %v463_v16 = vpop.permute.xlu0 %462 }
 0x5c3   :  { %v465_v18 = vadd.f32 %v463_v16, %v2049_v5 }
 0x5c5   :  { %v475_v25 = vmul.f32 %v473_v17, %v465_v18 }
 0x5c7   :  { %v498_v32 = vadd.f32 %v478_v2, %v475_v25 }
 0x614   :  { %v490_v4 = vpop.permute.xlu1 %489 }
 0x615   :  { %v492_v15 = vadd.f32 %v490_v4, %v486_v3 }
 0x617   :  { %494 = vrot.lane.b32.xlu2 %v492_v15, %s1849_s27 }
 0x61c   :  { %v483_v24 = vpop.permute.xlu1 %482 }
 0x61d   :  { %v485_v30 = vadd.f32 %v483_v24, %v479_v19 }
 0x671   :  { %v495_v31 = vpop.permute.xlu2 %494 }
 0x672   :  { %v497_v33 = vmul.f32 %v495_v31, %v485_v30 }
 0x674   :  { %v499_v34 = vsub.f32 %v498_v32, %v497_v33  ;;  %v500_v43 = vadd.f32 1.0, %v497_v33 }
 0x676   :  { %v501_v35 = vadd.f32 1.0, %v499_v34 }
 0x678   :  { %1630 = vrcp.f32 %v501_v35  ;;  %v513_v39 = vand.u32 2147483648, %v501_v35  ;;  %v511_v41 = vand.u32 2147483647, %v501_v35  ;;  %vm507_vm8 = vweird.f32 %v501_v35 }
 0x67a   :  { %v514_v5 = vor.u32 1.1754944e-38, %v513_v39  ;;  %vm512_vm10 = vcmp.eq.f32.partialorder %v511_v41, 8.507059e+37 }
 0x67e   :  { %v1631_v36 = vpop.eup %1630 }
 0x67f   :  { %v503_v37 = vmul.f32 %v1631_v36, %v501_v35  ;;  %vm508_vm7 = vweird.f32 %v1631_v36 }
 0x680   :  { %vm509_vm9 = vmor %vm507_vm8, %vm508_vm7 }
 0x681   :  { %v504_v38 = vsub.f32 1.0, %v503_v37 }
 0x683   :  { %v505_v40 = vmul.f32 %v1631_v36, %v504_v38 }
 0x685   :  { %v506_v42 = vadd.f32 %v1631_v36, %v505_v40 }
 0x687   :  { %v510_v44 = vsel %vm509_vm9, %v1631_v36, %v506_v42 }
 0x688   :  { %v515_v45 = vsel %vm512_vm10, %v514_v5, %v510_v44 }
 0x689   :  { %v516_v46 = vmul.f32 %v515_v45, %v500_v43 }
 0x68b   :  { %1632 = vlog2.f32 %v516_v46 }
 0x691   :  { %v1633_v47 = vpop.eup %1632 }
 0x692   :  { %v518_v48 = vmul.f32 0.6931472, %v1633_v47 }
 0x694   :  { %v519_v49 = vsub.f32 0.0, %v518_v48 }
 0x696   :  { %v521_v50 = vsel %vm520_vm11, %v519_v49, 0.0 }
 0x697   :  { %v522_v51 = vrot.slane %v521_v50, 4 }
 0x699   :  { %v523_v52 = vadd.f32 %v522_v51, %v521_v50 }
 0x69b   :  { %v524_v53 = vrot.slane %v523_v52, 2 }
 0x69d   :  { %v525_v54 = vadd.f32 %v524_v53, %v523_v52 }
 0x69f   :  { %v526_v55 = vrot.slane %v525_v54, 1 }
 0x6a1   :  { %v527_v56 = vadd.f32 %v526_v55, %v525_v54 }
 0x6a3   :  { %v528_v58 = vmul.f32 0.125, %v527_v56 }
 0x6a5   :  { %v530_v59 = vadd.f32 %v529_v57, %v528_v58 }
 0x6a7   :  { %531 = vst.msk [vmem:[#allocation8] sm:$0x1] %vm103_vm0, %v530_v59 }
 0x6a8 PF:  { %s1487_s28 = sld [smem:[#allocation3 + $0x3]] }
 0x6ae   :  { %p1488_p3 = scmp.ne.s32.totalorder %s1487_s28, 1 }
 0x6af   :  { %s1850_s29 = smov (!%p1488_p3), 112   ;;  %s1851_s1 = smov (!%p1488_p3), 127  }
 0x6b0   :  { %536 = sbr.rel (%p1488_p3) target bundleno = 2221 (0x8ad), region = 45  ;;  %s1852_s0 = smov (!%p1488_p3), 126  }
 0x6b1   :  { %s1853_s30 = smov (!%p1488_p3), 1   ;;  %s1854_s6 = smov (!%p1488_p3), 125  }
 0x6b5   :  { %v1644_v60 = vpack.i.bf16 %v1968_v27, %v1966_v26  ;;  %v1634_v61 = vpack.i.bf16 %v1960_v21, %v1958_v20  ;;  %v1649_v62 = vpack.i.bf16 %v1964_v23, %v1962_v22  ;;  %v1639_v63 = vpack.i.bf16 %v1972_v29, %v1970_v28 }
 0x6b6   :  { %v1489_v0 = vadd.f32 0.05, %v1956_v14  ;;  %vm561_vm12 = vcmask 916480   ;;  %v603_v50 = vadd.f32 -0.05, %v1956_v14  ;;  %vm664_vm2 = vcmask 7168  }
 0x6b7   :  { %1645 = vrot.lane.b32.xlu1 %v1644_v60, %s1850_s29  ;;  %1635 = vrot.lane.b32.xlu0 %v1634_v61, %s1850_s29 }
 0x6b8   :  { %1650 = vrot.lane.b32.xlu2 %v1649_v62, %s1850_s29 }
 0x6bf   :  { %1640 = vrot.lane.b32.xlu0 %v1639_v63, %s1850_s29 }
 0x6c0   :  { %611 = vrot.lane.b32.xlu2 %v1489_v0, %s1851_s1 }
 0x712   :  { %v1651_v1 = vpop.permute.xlu2 %1650 }
 0x713   :  { %v1653_v4 = vunpack.i.h.bf16 %v1651_v1  ;;  %v1652_v15 = vunpack.i.l.bf16 %v1651_v1 }
 0x715   :  { %v562_v36 = vsel %vm561_vm12, %v1652_v15, %v1653_v4  ;;  %v578_v37 = vsel %vm561_vm12, %v1653_v4, %v1652_v15 }
 0x716   :  { %v582_v41 = vmul.f32 %v562_v36, %v1937_v6  ;;  %v583_v42 = vmul.f32 %v578_v37, %v1939_v7 }
 0x718   :  { %v590_v46 = vadd.f32 %v583_v42, %v582_v41 }
 0x71a   :  { %v612_v51 = vpop.permute.xlu2 %611 }
 0x71b   :  { %v614_v52 = vadd.f32 %v612_v51, %v603_v50 }
 0x729   :  { %v1646_v2 = vpop.permute.xlu1 %1645  ;;  %v1636_v3 = vpop.permute.xlu0 %1635 }
 0x72a   :  { %v1648_v16 = vunpack.i.h.bf16 %v1646_v2  ;;  %v1647_v17 = vunpack.i.l.bf16 %v1646_v2  ;;  %v1638_v18 = vunpack.i.h.bf16 %v1636_v3  ;;  %v1637_v19 = vunpack.i.l.bf16 %v1636_v3 }
 0x72c   :  { %v565_v24 = vsel %vm561_vm12, %v1647_v17, %v1648_v16  ;;  %v581_v25 = vsel %vm561_vm12, %v1648_v16, %v1647_v17  ;;  %v564_v30 = vsel %vm561_vm12, %v1637_v19, %v1638_v18  ;;  %v580_v31 = vsel %vm561_vm12, %v1638_v18, %v1637_v19 }
 0x72d   :  { %v588_v32 = vmul.f32 %v565_v24, %v1949_v12  ;;  %v589_v33 = vmul.f32 %v581_v25, %v1951_v13  ;;  %v586_v34 = vmul.f32 %v564_v30, %v1945_v10  ;;  %v587_v35 = vmul.f32 %v580_v31, %v1947_v11 }
 0x72f   :  { %v599_v38 = vadd.f32 %v589_v33, %v588_v32  ;;  %v596_v39 = vadd.f32 %v587_v35, %v586_v34 }
 0x731   :  { %600 = vadd.xlane.f32.xlu0 %v599_v38  ;;  %v1641_v40 = vpop.permute.xlu0 %1640  ;;  %597 = vadd.xlane.f32.xlu1 %v596_v39 }
 0x732   :  { %v1643_v5 = vunpack.i.h.bf16 %v1641_v40  ;;  %v1642_v43 = vunpack.i.l.bf16 %v1641_v40 }
 0x734   :  { %v563_v44 = vsel %vm561_vm12, %v1642_v43, %v1643_v5  ;;  %v579_v45 = vsel %vm561_vm12, %v1643_v5, %v1642_v43 }
 0x735   :  { %v584_v47 = vmul.f32 %v563_v44, %v1941_v8  ;;  %v585_v48 = vmul.f32 %v579_v45, %v1943_v9 }
 0x737   :  { %v593_v49 = vadd.f32 %v585_v48, %v584_v47 }
 0x739   :  { %591 = vadd.xlane.f32.xlu0 %v590_v46  ;;  %594 = vadd.xlane.f32.xlu2 %v593_v49 }
 0x74d   :  { %606 = vrot.lane.b32.xlu0 %v1956_v14, %s1851_s1 }
 0x751   :  { %616 = vrot.lane.b32.xlu2 %v614_v52, %s1852_s0  ;;  %v673_v52 = vld [vmem:[#allocation8] sm:$0x1] }
 0x7a4   :  { %v601_v53 = vpop.xlane.xlu0 %600  ;;  %v598_v54 = vpop.xlane.xlu1 %597 }
 0x7a5   :  { %v631_v55 = vmin.f32 %v598_v54, %v603_v50  ;;  %v621_v58 = vadd.f32 %v601_v53, %v598_v54  ;;  %v630_v62 = vmin.f32 %v601_v53, %v1489_v0 }
 0x7a7   :  { %633 = vrot.lane.b32.xlu1 %v631_v55, %s1853_s30 }
 0x7ac   :  { %v592_v56 = vpop.xlane.xlu0 %591  ;;  %v595_v57 = vpop.xlane.xlu2 %594 }
 0x7ad   :  { %v620_v59 = vadd.f32 %v595_v57, %v592_v56  ;;  %v624_v60 = vmin.f32 %v595_v57, %v1956_v14  ;;  %v623_v15 = vmin.f32 %v592_v56, %v1956_v14 }
 0x7af   :  { %v622_v61 = vmul.f32 %v621_v58, %v620_v59  ;;  %626 = vrot.lane.b32.xlu1 %v624_v60, %s1851_s1 }
 0x7b4   :  { %v617_v3 = vpop.permute.xlu2 %616 }
 0x7bf   :  { %v607_v2 = vpop.permute.xlu0 %606 }
 0x7c0   :  { %v609_v4 = vadd.f32 %v607_v2, %v1956_v14 }
 0x7c2   :  { %v619_v17 = vmul.f32 %v617_v3, %v609_v4 }
 0x7c4   :  { %v642_v24 = vadd.f32 %v622_v61, %v619_v17 }
 0x819   :  { %v634_v63 = vpop.permute.xlu1 %633 }
 0x81a   :  { %v636_v1 = vadd.f32 %v634_v63, %v630_v62 }
 0x81c   :  { %638 = vrot.lane.b32.xlu2 %v636_v1, %s1854_s6 }
 0x821   :  { %v627_v16 = vpop.permute.xlu1 %626 }
 0x822   :  { %v629_v18 = vadd.f32 %v627_v16, %v623_v15 }
 0x876   :  { %v639_v19 = vpop.permute.xlu2 %638 }
 0x877   :  { %v641_v25 = vmul.f32 %v639_v19, %v629_v18 }
 0x879   :  { %v643_v30 = vsub.f32 %v642_v24, %v641_v25  ;;  %v644_v39 = vadd.f32 1.0, %v641_v25 }
 0x87b   :  { %v645_v31 = vadd.f32 1.0, %v643_v30 }
 0x87d   :  { %1654 = vrcp.f32 %v645_v31  ;;  %v657_v34 = vand.u32 2147483648, %v645_v31  ;;  %v655_v36 = vand.u32 2147483647, %v645_v31  ;;  %vm651_vm14 = vweird.f32 %v645_v31 }
 0x87f   :  { %v658_v38 = vor.u32 1.1754944e-38, %v657_v34  ;;  %vm656_vm1 = vcmp.eq.f32.partialorder %v655_v36, 8.507059e+37 }
 0x883   :  { %v1655_v0 = vpop.eup %1654 }
 0x884   :  { %v647_v32 = vmul.f32 %v1655_v0, %v645_v31  ;;  %vm652_vm13 = vweird.f32 %v1655_v0 }
 0x885   :  { %vm653_vm15 = vmor %vm651_vm14, %vm652_vm13 }
 0x886   :  { %v648_v33 = vsub.f32 1.0, %v647_v32 }
 0x888   :  { %v649_v35 = vmul.f32 %v1655_v0, %v648_v33 }
 0x88a   :  { %v650_v37 = vadd.f32 %v1655_v0, %v649_v35 }
 0x88c   :  { %v654_v40 = vsel %vm653_vm15, %v1655_v0, %v650_v37 }
 0x88d   :  { %v659_v41 = vsel %vm656_vm1, %v658_v38, %v654_v40 }
 0x88e   :  { %v660_v42 = vmul.f32 %v659_v41, %v644_v39 }
 0x890   :  { %1656 = vlog2.f32 %v660_v42 }
 0x896   :  { %v1657_v5 = vpop.eup %1656 }
 0x897   :  { %v662_v43 = vmul.f32 0.6931472, %v1657_v5 }
 0x899   :  { %v663_v44 = vsub.f32 0.0, %v662_v43 }
 0x89b   :  { %v665_v45 = vsel %vm664_vm2, %v663_v44, 0.0 }
 0x89c   :  { %v666_v46 = vrot.slane %v665_v45, 4 }
 0x89e   :  { %v667_v47 = vadd.f32 %v666_v46, %v665_v45 }
 0x8a0   :  { %v668_v48 = vrot.slane %v667_v47, 2 }
 0x8a2   :  { %v669_v49 = vadd.f32 %v668_v48, %v667_v47 }
 0x8a4   :  { %v670_v50 = vrot.slane %v669_v49, 1 }
 0x8a6   :  { %v671_v51 = vadd.f32 %v670_v50, %v669_v49 }
 0x8a8   :  { %v672_v53 = vmul.f32 0.125, %v671_v51 }
 0x8aa   :  { %v674_v54 = vadd.f32 %v673_v52, %v672_v53 }
 0x8ac   :  { %675 = vst.msk [vmem:[#allocation8] sm:$0x1] %vm103_vm0, %v674_v54 }
 0x8ad PF:  { %s1490_s3 = sld [smem:[#allocation3 + $0x4]] }
 0x8b3   :  { %p1491_p4 = scmp.ne.s32.totalorder %s1490_s3, 1 }
 0x8b4   :  { %s1855_s7 = smov (!%p1491_p4), 127   ;;  %s1856_s8 = smov (!%p1491_p4), 1  }
 0x8b5   :  { %680 = sbr.rel (%p1491_p4) target bundleno = 2618 (0xa3a), region = 49  ;;  %s1857_s9 = smov (!%p1491_p4), 126  }
 0x8b6   :  { %s1858_s10 = smov (!%p1491_p4), 125  }
 0x8ba   :  { %v687_v55 = vmul.f32 %v1966_v26, %v1949_v12  ;;  %v688_v56 = vmul.f32 %v1968_v27, %v1951_v13  ;;  %v685_v57 = vmul.f32 %v1958_v20, %v1945_v10  ;;  %v686_v58 = vmul.f32 %v1960_v21, %v1947_v11 }
 0x8bb   :  { %v683_v61 = vmul.f32 %v1970_v28, %v1941_v8  ;;  %v684_v62 = vmul.f32 %v1972_v29, %v1943_v9  ;;  %v681_v19 = vmul.f32 %v1962_v22, %v1937_v6  ;;  %v682_v24 = vmul.f32 %v1964_v23, %v1939_v7 }
 0x8bc   :  { %v698_v59 = vadd.f32 %v688_v56, %v687_v55  ;;  %v695_v60 = vadd.f32 %v686_v58, %v685_v57  ;;  %vm756_vm7 = vcmask 7168  }
 0x8bd   :  { %v692_v63 = vadd.f32 %v684_v62, %v683_v61  ;;  %v689_v25 = vadd.f32 %v682_v24, %v681_v19 }
 0x8be   :  { %699 = vadd.xlane.f32.xlu1 %v698_v59  ;;  %696 = vadd.xlane.f32.xlu0 %v695_v60 }
 0x8c6   :  { %693 = vadd.xlane.f32.xlu0 %v692_v63 }
 0x8d7   :  { %703 = vrot.lane.b32.xlu1 %v1956_v14, %s1855_s7 }
 0x931   :  { %v700_v1 = vpop.xlane.xlu1 %699  ;;  %v697_v2 = vpop.xlane.xlu0 %696 }
 0x932   :  { %v713_v3 = vadd.f32 %v700_v1, %v697_v2  ;;  %v723_v4 = vmin.f32 %v697_v2, %v1956_v14  ;;  %v722_v30 = vmin.f32 %v700_v1, %v1956_v14 }
 0x934   :  { %725 = vrot.lane.b32.xlu2 %v723_v4, %s1856_s8 }
 0x939   :  { %v694_v15 = vpop.xlane.xlu0 %693 }
 0x93a   :  { %v716_v16 = vmin.f32 %v694_v15, %v1956_v14 }
 0x93c   :  { %718 = vrot.lane.b32.xlu1 %v716_v16, %s1855_s7 }
 0x949   :  { %v704_v17 = vpop.permute.xlu1 %703 }
 0x94a   :  { %v706_v18 = vadd.f32 %v704_v17, %v1956_v14 }
 0x94c   :  { %708 = vrot.lane.b32.xlu0 %v706_v18, %s1857_s9 }
 0x95d   :  { %690 = vadd.xlane.f32.xlu2 %v689_v25 }
 0x98e   :  { %v726_v31 = vpop.permute.xlu2 %725 }
 0x98f   :  { %v728_v0 = vadd.f32 %v726_v31, %v722_v30 }
 0x991   :  { %730 = vrot.lane.b32.xlu0 %v728_v0, %s1858_s10 }
 0x9ae   :  { %v719_v36 = vpop.permute.xlu1 %718 }
 0x9be   :  { %v709_v33 = vpop.permute.xlu0 %708 }
 0x9bf   :  { %v711_v39 = vmul.f32 %v709_v33, %v706_v18 }
 0x9d0   :  { %v691_v32 = vpop.xlane.xlu2 %690 }
 0x9d1   :  { %v712_v34 = vadd.f32 %v694_v15, %v691_v32  ;;  %v715_v35 = vmin.f32 %v691_v32, %v1956_v14 }
 0x9d3   :  { %v714_v37 = vmul.f32 %v713_v3, %v712_v34  ;;  %v721_v38 = vadd.f32 %v719_v36, %v715_v35  ;;  %v765_v3 = vld [vmem:[#allocation8] sm:$0x1] }
 0x9d5   :  { %v734_v42 = vadd.f32 %v714_v37, %v711_v39 }
 0xa03   :  { %v731_v40 = vpop.permute.xlu0 %730 }
 0xa04   :  { %v733_v41 = vmul.f32 %v731_v40, %v721_v38 }
 0xa06   :  { %v735_v5 = vsub.f32 %v734_v42, %v733_v41  ;;  %v736_v52 = vadd.f32 1.0, %v733_v41 }
 0xa08   :  { %v737_v43 = vadd.f32 1.0, %v735_v5 }
 0xa0a   :  { %1658 = vrcp.f32 %v737_v43  ;;  %v749_v47 = vand.u32 2147483648, %v737_v43  ;;  %v747_v49 = vand.u32 2147483647, %v737_v43  ;;  %vm743_vm4 = vweird.f32 %v737_v43 }
 0xa0c   :  { %v750_v51 = vor.u32 1.1754944e-38, %v749_v47  ;;  %vm748_vm6 = vcmp.eq.f32.partialorder %v747_v49, 8.507059e+37 }
 0xa10   :  { %v1659_v44 = vpop.eup %1658 }
 0xa11   :  { %v739_v45 = vmul.f32 %v1659_v44, %v737_v43  ;;  %vm744_vm3 = vweird.f32 %v1659_v44 }
 0xa12   :  { %vm745_vm5 = vmor %vm743_vm4, %vm744_vm3 }
 0xa13   :  { %v740_v46 = vsub.f32 1.0, %v739_v45 }
 0xa15   :  { %v741_v48 = vmul.f32 %v1659_v44, %v740_v46 }
 0xa17   :  { %v742_v50 = vadd.f32 %v1659_v44, %v741_v48 }
 0xa19   :  { %v746_v53 = vsel %vm745_vm5, %v1659_v44, %v742_v50 }
 0xa1a   :  { %v751_v54 = vsel %vm748_vm6, %v750_v51, %v746_v53 }
 0xa1b   :  { %v752_v55 = vmul.f32 %v751_v54, %v736_v52 }
 0xa1d   :  { %1660 = vlog2.f32 %v752_v55 }
 0xa23   :  { %v1661_v56 = vpop.eup %1660 }
 0xa24   :  { %v754_v57 = vmul.f32 0.6931472, %v1661_v56 }
 0xa26   :  { %v755_v58 = vsub.f32 0.0, %v754_v57 }
 0xa28   :  { %v757_v59 = vsel %vm756_vm7, %v755_v58, 0.0 }
 0xa29   :  { %v758_v60 = vrot.slane %v757_v59, 4 }
 0xa2b   :  { %v759_v61 = vadd.f32 %v758_v60, %v757_v59 }
 0xa2d   :  { %v760_v62 = vrot.slane %v759_v61, 2 }
 0xa2f   :  { %v761_v63 = vadd.f32 %v760_v62, %v759_v61 }
 0xa31   :  { %v762_v1 = vrot.slane %v761_v63, 1 }
 0xa33   :  { %v763_v2 = vadd.f32 %v762_v1, %v761_v63 }
 0xa35   :  { %v764_v4 = vmul.f32 0.125, %v763_v2 }
 0xa37   :  { %v766_v15 = vadd.f32 %v765_v3, %v764_v4 }
 0xa39   :  { %767 = vst.msk [vmem:[#allocation8] sm:$0x1] %vm103_vm0, %v766_v15 }
 0xa3a PF:  { %s1492_s11 = sld [smem:[#allocation3 + $0x5]] }
 0xa40   :  { %p1493_p5 = scmp.ne.s32.totalorder %s1492_s11, 1 }
 0xa41   :  { %s1859_s12 = smov (!%p1493_p5), 16   ;;  %s1860_s2 = smov (!%p1493_p5), 127  }
 0xa42   :  { %772 = sbr.rel (%p1493_p5) target bundleno = 3135 (0xc3f), region = 53  ;;  %s1861_s4 = smov (!%p1493_p5), 126  }
 0xa43   :  { %s1862_s13 = smov (!%p1493_p5), 1   ;;  %s1863_s14 = smov (!%p1493_p5), 125  }
 0xa47   :  { %v1662_v16 = vpack.i.bf16 %v1958_v20, %v1960_v21  ;;  %v1672_v17 = vpack.i.bf16 %v1966_v26, %v1970_v28  ;;  %v1677_v18 = vpack.i.bf16 %v1962_v22, %v1964_v23  ;;  %v1667_v19 = vpack.i.bf16 %v1968_v27, %v1972_v29 }
 0xa48   :  { %v1494_v24 = vadd.f32 -0.05, %v1956_v14  ;;  %vm801_vm8 = vcmask 130048   ;;  %v839_v59 = vadd.f32 0.05, %v1956_v14  ;;  %vm900_vm13 = vcmask 7168  }
 0xa49   :  { %1663 = vrot.lane.b32.xlu0 %v1662_v16, %s1859_s12  ;;  %1673 = vrot.lane.b32.xlu1 %v1672_v17, %s1859_s12 }
 0xa4a   :  { %1678 = vrot.lane.b32.xlu2 %v1677_v18, %s1859_s12 }
 0xa51   :  { %1668 = vrot.lane.b32.xlu0 %v1667_v19, %s1859_s12 }
 0xa52   :  { %847 = vrot.lane.b32.xlu2 %v1494_v24, %s1860_s2 }
 0xaa4   :  { %v1679_v37 = vpop.permute.xlu2 %1678 }
 0xaa5   :  { %v1681_v5 = vunpack.i.h.bf16 %v1679_v37  ;;  %v1680_v43 = vunpack.i.l.bf16 %v1679_v37 }
 0xaa7   :  { %v802_v52 = vsel %vm801_vm8, %v1681_v5, %v1680_v43  ;;  %v814_v53 = vsel %vm801_vm8, %v1680_v43, %v1681_v5 }
 0xaa8   :  { %v818_v56 = vmul.f32 %v814_v53, %v1937_v6  ;;  %v819_v57 = vmul.f32 %v802_v52, %v1939_v7 }
 0xaaa   :  { %v826_v58 = vadd.f32 %v819_v57, %v818_v56 }
 0xaac   :  { %v848_v60 = vpop.permute.xlu2 %847 }
 0xaad   :  { %v850_v61 = vadd.f32 %v848_v60, %v839_v59 }
 0xabb   :  { %v1664_v25 = vpop.permute.xlu0 %1663  ;;  %v1674_v33 = vpop.permute.xlu1 %1673 }
 0xabc   :  { %v1666_v30 = vunpack.i.h.bf16 %v1664_v25  ;;  %v1665_v31 = vunpack.i.l.bf16 %v1664_v25  ;;  %v1676_v38 = vunpack.i.h.bf16 %v1674_v33  ;;  %v1675_v39 = vunpack.i.l.bf16 %v1674_v33 }
 0xabe   :  { %v804_v0 = vsel %vm801_vm8, %v1666_v30, %v1665_v31  ;;  %v816_v32 = vsel %vm801_vm8, %v1665_v31, %v1666_v30 }
 0xabf   :  { %v822_v34 = vmul.f32 %v816_v32, %v1945_v10  ;;  %v823_v35 = vmul.f32 %v804_v0, %v1947_v11 }
 0xac1   :  { %v832_v36 = vadd.f32 %v823_v35, %v822_v34 }
 0xac3   :  { %v1669_v40 = vpop.permute.xlu0 %1668  ;;  %833 = vadd.xlane.f32.xlu1 %v832_v36 }
 0xac4   :  { %v1671_v41 = vunpack.i.h.bf16 %v1669_v40  ;;  %v1670_v42 = vunpack.i.l.bf16 %v1669_v40 }
 0xac6   :  { %v805_v44 = vsel %vm801_vm8, %v1676_v38, %v1671_v41  ;;  %v817_v45 = vsel %vm801_vm8, %v1671_v41, %v1676_v38  ;;  %v803_v46 = vsel %vm801_vm8, %v1675_v39, %v1670_v42  ;;  %v815_v47 = vsel %vm801_vm8, %v1670_v42, %v1675_v39 }
 0xac7   :  { %v824_v48 = vmul.f32 %v817_v45, %v1949_v12  ;;  %v825_v49 = vmul.f32 %v805_v44, %v1951_v13  ;;  %v820_v50 = vmul.f32 %v815_v47, %v1941_v8  ;;  %v821_v51 = vmul.f32 %v803_v46, %v1943_v9 }
 0xac9   :  { %v835_v54 = vadd.f32 %v825_v49, %v824_v48  ;;  %v829_v55 = vadd.f32 %v821_v51, %v820_v50 }
 0xacb   :  { %836 = vadd.xlane.f32.xlu0 %v835_v54  ;;  %830 = vadd.xlane.f32.xlu2 %v829_v55 }
 0xad3   :  { %827 = vadd.xlane.f32.xlu0 %v826_v58 }
 0xae3   :  { %852 = vrot.lane.b32.xlu2 %v850_v61, %s1861_s4  ;;  %v909_v61 = vld [vmem:[#allocation8] sm:$0x1] }
 0xae7   :  { %842 = vrot.lane.b32.xlu0 %v1956_v14, %s1860_s2 }
 0xb36   :  { %v834_v62 = vpop.xlane.xlu1 %833 }
 0xb37   :  { %v867_v63 = vmin.f32 %v834_v62, %v839_v59 }
 0xb39   :  { %869 = vrot.lane.b32.xlu1 %v867_v63, %s1862_s13 }
 0xb3e   :  { %v837_v1 = vpop.xlane.xlu0 %836  ;;  %v831_v2 = vpop.xlane.xlu2 %830 }
 0xb3f   :  { %v860_v3 = vmin.f32 %v831_v2, %v1956_v14  ;;  %v857_v15 = vadd.f32 %v837_v1, %v834_v62  ;;  %v866_v18 = vmin.f32 %v837_v1, %v1494_v24 }
 0xb41   :  { %862 = vrot.lane.b32.xlu1 %v860_v3, %s1860_s2 }
 0xb46   :  { %v828_v4 = vpop.xlane.xlu0 %827  ;;  %v853_v31 = vpop.permute.xlu2 %852 }
 0xb47   :  { %v856_v16 = vadd.f32 %v831_v2, %v828_v4  ;;  %v859_v32 = vmin.f32 %v828_v4, %v1956_v14 }
 0xb49   :  { %v858_v17 = vmul.f32 %v857_v15, %v856_v16 }
 0xb59   :  { %v843_v30 = vpop.permute.xlu0 %842 }
 0xb5a   :  { %v845_v0 = vadd.f32 %v843_v30, %v1956_v14 }
 0xb5c   :  { %v855_v34 = vmul.f32 %v853_v31, %v845_v0 }
 0xb5e   :  { %v878_v37 = vadd.f32 %v858_v17, %v855_v34 }
 0xbab   :  { %v870_v19 = vpop.permute.xlu1 %869 }
 0xbac   :  { %v872_v25 = vadd.f32 %v870_v19, %v866_v18 }
 0xbae   :  { %874 = vrot.lane.b32.xlu2 %v872_v25, %s1863_s14 }
 0xbb3   :  { %v863_v33 = vpop.permute.xlu1 %862 }
 0xbb4   :  { %v865_v35 = vadd.f32 %v863_v33, %v859_v32 }
 0xc08   :  { %v875_v36 = vpop.permute.xlu2 %874 }
 0xc09   :  { %v877_v38 = vmul.f32 %v875_v36, %v865_v35 }
 0xc0b   :  { %v879_v39 = vsub.f32 %v878_v37, %v877_v38  ;;  %v880_v47 = vadd.f32 1.0, %v877_v38 }
 0xc0d   :  { %v881_v40 = vadd.f32 1.0, %v879_v39 }
 0xc0f   :  { %1682 = vrcp.f32 %v881_v40  ;;  %v893_v5 = vand.u32 2147483648, %v881_v40  ;;  %v891_v44 = vand.u32 2147483647, %v881_v40  ;;  %vm887_vm10 = vweird.f32 %v881_v40 }
 0xc11   :  { %v894_v46 = vor.u32 1.1754944e-38, %v893_v5  ;;  %vm892_vm12 = vcmp.eq.f32.partialorder %v891_v44, 8.507059e+37 }
 0xc15   :  { %v1683_v24 = vpop.eup %1682 }
 0xc16   :  { %v883_v41 = vmul.f32 %v1683_v24, %v881_v40  ;;  %vm888_vm9 = vweird.f32 %v1683_v24 }
 0xc17   :  { %vm889_vm11 = vmor %vm887_vm10, %vm888_vm9 }
 0xc18   :  { %v884_v42 = vsub.f32 1.0, %v883_v41 }
 0xc1a   :  { %v885_v43 = vmul.f32 %v1683_v24, %v884_v42 }
 0xc1c   :  { %v886_v45 = vadd.f32 %v1683_v24, %v885_v43 }
 0xc1e   :  { %v890_v48 = vsel %vm889_vm11, %v1683_v24, %v886_v45 }
 0xc1f   :  { %v895_v49 = vsel %vm892_vm12, %v894_v46, %v890_v48 }
 0xc20   :  { %v896_v50 = vmul.f32 %v895_v49, %v880_v47 }
 0xc22   :  { %1684 = vlog2.f32 %v896_v50 }
 0xc28   :  { %v1685_v51 = vpop.eup %1684 }
 0xc29   :  { %v898_v52 = vmul.f32 0.6931472, %v1685_v51 }
 0xc2b   :  { %v899_v53 = vsub.f32 0.0, %v898_v52 }
 0xc2d   :  { %v901_v54 = vsel %vm900_vm13, %v899_v53, 0.0 }
 0xc2e   :  { %v902_v55 = vrot.slane %v901_v54, 4 }
 0xc30   :  { %v903_v56 = vadd.f32 %v902_v55, %v901_v54 }
 0xc32   :  { %v904_v57 = vrot.slane %v903_v56, 2 }
 0xc34   :  { %v905_v58 = vadd.f32 %v904_v57, %v903_v56 }
 0xc36   :  { %v906_v59 = vrot.slane %v905_v58, 1 }
 0xc38   :  { %v907_v60 = vadd.f32 %v906_v59, %v905_v58 }
 0xc3a   :  { %v908_v62 = vmul.f32 0.125, %v907_v60 }
 0xc3c   :  { %v910_v63 = vadd.f32 %v909_v61, %v908_v62 }
 0xc3e   :  { %911 = vst.msk [vmem:[#allocation8] sm:$0x1] %vm103_vm0, %v910_v63 }
 0xc3f PF:  { %s1495_s15 = sld [smem:[#allocation3 + $0x6]] }
 0xc45   :  { %p1496_p6 = scmp.ne.s32.totalorder %s1495_s15, 1 }
 0xc46   :  { %s1864_s16 = smov (!%p1496_p6), 113   ;;  %s1865_s17 = smov (!%p1496_p6), 127  }
 0xc47   :  { %916 = sbr.rel (%p1496_p6) target bundleno = 3652 (0xe44), region = 57  ;;  %s1866_s18 = smov (!%p1496_p6), 126  }
 0xc48   :  { %s1867_s19 = smov (!%p1496_p6), 1   ;;  %s1868_s20 = smov (!%p1496_p6), 125  }
 0xc4c   :  { %v1696_v1 = vpack.i.bf16 %v1968_v27, %v1966_v26  ;;  %v1686_v2 = vpack.i.bf16 %v1960_v21, %v1958_v20  ;;  %v1701_v3 = vpack.i.bf16 %v1964_v23, %v1962_v22  ;;  %v1691_v4 = vpack.i.bf16 %v1972_v29, %v1970_v28 }
 0xc4d   :  { %v2176_v15 = vadd.f32 0.05, %v1956_v14  ;;  %vm941_vm14 = vcmask 924672   ;;  %v1497_v54 = vadd.f32 -0.05, %v1956_v14  ;;  %vm1045_vm4 = vcmask 7168  }
 0xc4e   :  { %1697 = vrot.lane.b32.xlu1 %v1696_v1, %s1864_s16  ;;  %1687 = vrot.lane.b32.xlu0 %v1686_v2, %s1864_s16 }
 0xc4f   :  { %1702 = vrot.lane.b32.xlu2 %v1701_v3, %s1864_s16 }
 0xc56   :  { %1692 = vrot.lane.b32.xlu0 %v1691_v4, %s1864_s16 }
 0xc57   :  { %992 = vrot.lane.b32.xlu2 %v2176_v15, %s1865_s17 }
 0xca9   :  { %v1703_v16 = vpop.permute.xlu2 %1702 }
 0xcaa   :  { %v1705_v19 = vunpack.i.h.bf16 %v1703_v16  ;;  %v1704_v25 = vunpack.i.l.bf16 %v1703_v16 }
 0xcac   :  { %v942_v24 = vsel %vm941_vm14, %v1704_v25, %v1705_v19  ;;  %v958_v41 = vsel %vm941_vm14, %v1705_v19, %v1704_v25 }
 0xcad   :  { %v962_v44 = vmul.f32 %v942_v24, %v1937_v6  ;;  %v963_v45 = vmul.f32 %v958_v41, %v1939_v7 }
 0xcaf   :  { %v970_v50 = vadd.f32 %v963_v45, %v962_v44 }
 0xcb1   :  { %v993_v55 = vpop.permute.xlu2 %992 }
 0xcb2   :  { %v995_v56 = vadd.f32 %v1497_v54, %v993_v55 }
 0xcc0   :  { %v1698_v17 = vpop.permute.xlu1 %1697  ;;  %v1688_v18 = vpop.permute.xlu0 %1687 }
 0xcc1   :  { %v1700_v30 = vunpack.i.h.bf16 %v1698_v17  ;;  %v1699_v31 = vunpack.i.l.bf16 %v1698_v17  ;;  %v1690_v0 = vunpack.i.h.bf16 %v1688_v18  ;;  %v1689_v32 = vunpack.i.l.bf16 %v1688_v18 }
 0xcc3   :  { %v945_v33 = vsel %vm941_vm14, %v1699_v31, %v1700_v30  ;;  %v961_v34 = vsel %vm941_vm14, %v1700_v30, %v1699_v31  ;;  %v944_v35 = vsel %vm941_vm14, %v1689_v32, %v1690_v0  ;;  %v960_v36 = vsel %vm941_vm14, %v1690_v0, %v1689_v32 }
 0xcc4   :  { %v968_v37 = vmul.f32 %v945_v33, %v1949_v12  ;;  %v969_v38 = vmul.f32 %v961_v34, %v1951_v13  ;;  %v966_v39 = vmul.f32 %v944_v35, %v1945_v10  ;;  %v967_v40 = vmul.f32 %v960_v36, %v1947_v11 }
 0xcc6   :  { %v979_v42 = vadd.f32 %v969_v38, %v968_v37  ;;  %v976_v5 = vadd.f32 %v967_v40, %v966_v39 }
 0xcc8   :  { %980 = vadd.xlane.f32.xlu0 %v979_v42  ;;  %v1693_v43 = vpop.permute.xlu0 %1692  ;;  %977 = vadd.xlane.f32.xlu1 %v976_v5 }
 0xcc9   :  { %v1695_v46 = vunpack.i.h.bf16 %v1693_v43  ;;  %v1694_v47 = vunpack.i.l.bf16 %v1693_v43 }
 0xccb   :  { %v943_v48 = vsel %vm941_vm14, %v1694_v47, %v1695_v46  ;;  %v959_v49 = vsel %vm941_vm14, %v1695_v46, %v1694_v47 }
 0xccc   :  { %v964_v51 = vmul.f32 %v943_v48, %v1941_v8  ;;  %v965_v52 = vmul.f32 %v959_v49, %v1943_v9 }
 0xcce   :  { %v973_v53 = vadd.f32 %v965_v52, %v964_v51 }
 0xcd0   :  { %971 = vadd.xlane.f32.xlu0 %v970_v50  ;;  %974 = vadd.xlane.f32.xlu2 %v973_v53 }
 0xce4   :  { %987 = vrot.lane.b32.xlu0 %v1497_v54, %s1865_s17 }
 0xce8   :  { %997 = vrot.lane.b32.xlu2 %v995_v56, %s1866_s18  ;;  %v1054_v56 = vld [vmem:[#allocation8] sm:$0x1] }
 0xd3b   :  { %v981_v57 = vpop.xlane.xlu0 %980  ;;  %v978_v58 = vpop.xlane.xlu1 %977 }
 0xd3c   :  { %v1012_v59 = vmin.f32 %v978_v58, %v1497_v54  ;;  %v1002_v62 = vadd.f32 %v981_v57, %v978_v58  ;;  %v1011_v3 = vmin.f32 %v981_v57, %v2176_v15 }
 0xd3e   :  { %1014 = vrot.lane.b32.xlu1 %v1012_v59, %s1867_s19 }
 0xd43   :  { %v972_v60 = vpop.xlane.xlu0 %971  ;;  %v975_v61 = vpop.xlane.xlu2 %974 }
 0xd44   :  { %v1001_v63 = vadd.f32 %v975_v61, %v972_v60  ;;  %v1005_v1 = vmin.f32 %v975_v61, %v1497_v54  ;;  %v1004_v25 = vmin.f32 %v972_v60, %v2176_v15 }
 0xd46   :  { %v1003_v2 = vmul.f32 %v1002_v62, %v1001_v63  ;;  %1007 = vrot.lane.b32.xlu1 %v1005_v1, %s1865_s17 }
 0xd4b   :  { %v998_v18 = vpop.permute.xlu2 %997 }
 0xd56   :  { %v988_v17 = vpop.permute.xlu0 %987 }
 0xd57   :  { %v990_v19 = vadd.f32 %v988_v17, %v2176_v15 }
 0xd59   :  { %v1000_v31 = vmul.f32 %v998_v18, %v990_v19 }
 0xd5b   :  { %v1023_v33 = vadd.f32 %v1003_v2, %v1000_v31 }
 0xdb0   :  { %v1015_v4 = vpop.permute.xlu1 %1014 }
 0xdb1   :  { %v1017_v16 = vadd.f32 %v1015_v4, %v1011_v3 }
 0xdb3   :  { %1019 = vrot.lane.b32.xlu2 %v1017_v16, %s1868_s20 }
 0xdb8   :  { %v1008_v30 = vpop.permute.xlu1 %1007 }
 0xdb9   :  { %v1010_v0 = vadd.f32 %v1008_v30, %v1004_v25 }
 0xe0d   :  { %v1020_v32 = vpop.permute.xlu2 %1019 }
 0xe0e   :  { %v1022_v34 = vmul.f32 %v1020_v32, %v1010_v0 }
 0xe10   :  { %v1024_v35 = vsub.f32 %v1023_v33, %v1022_v34  ;;  %v1025_v5 = vadd.f32 1.0, %v1022_v34 }
 0xe12   :  { %v1026_v36 = vadd.f32 1.0, %v1024_v35 }
 0xe14   :  { %1706 = vrcp.f32 %v1026_v36  ;;  %v1038_v40 = vand.u32 2147483648, %v1026_v36  ;;  %v1036_v41 = vand.u32 2147483647, %v1026_v36  ;;  %vm1032_vm1 = vweird.f32 %v1026_v36 }
 0xe16   :  { %v1039_v15 = vor.u32 1.1754944e-38, %v1038_v40  ;;  %vm1037_vm3 = vcmp.eq.f32.partialorder %v1036_v41, 8.507059e+37 }
 0xe1a   :  { %v1707_v37 = vpop.eup %1706 }
 0xe1b   :  { %v1028_v38 = vmul.f32 %v1707_v37, %v1026_v36  ;;  %vm1033_vm15 = vweird.f32 %v1707_v37 }
 0xe1c   :  { %vm1034_vm2 = vmor %vm1032_vm1, %vm1033_vm15 }
 0xe1d   :  { %v1029_v39 = vsub.f32 1.0, %v1028_v38 }
 0xe1f   :  { %v1030_v24 = vmul.f32 %v1707_v37, %v1029_v39 }
 0xe21   :  { %v1031_v42 = vadd.f32 %v1707_v37, %v1030_v24 }
 0xe23   :  { %v1035_v43 = vsel %vm1034_vm2, %v1707_v37, %v1031_v42 }
 0xe24   :  { %v1040_v44 = vsel %vm1037_vm3, %v1039_v15, %v1035_v43 }
 0xe25   :  { %v1041_v45 = vmul.f32 %v1040_v44, %v1025_v5 }
 0xe27   :  { %1708 = vlog2.f32 %v1041_v45 }
 0xe2d   :  { %v1709_v46 = vpop.eup %1708 }
 0xe2e   :  { %v1043_v47 = vmul.f32 0.6931472, %v1709_v46 }
 0xe30   :  { %v1044_v48 = vsub.f32 0.0, %v1043_v47 }
 0xe32   :  { %v1046_v49 = vsel %vm1045_vm4, %v1044_v48, 0.0 }
 0xe33   :  { %v1047_v50 = vrot.slane %v1046_v49, 4 }
 0xe35   :  { %v1048_v51 = vadd.f32 %v1047_v50, %v1046_v49 }
 0xe37   :  { %v1049_v52 = vrot.slane %v1048_v51, 2 }
 0xe39   :  { %v1050_v53 = vadd.f32 %v1049_v52, %v1048_v51 }
 0xe3b   :  { %v1051_v54 = vrot.slane %v1050_v53, 1 }
 0xe3d   :  { %v1052_v55 = vadd.f32 %v1051_v54, %v1050_v53 }
 0xe3f   :  { %v1053_v57 = vmul.f32 0.125, %v1052_v55 }
 0xe41   :  { %v1055_v58 = vadd.f32 %v1054_v56, %v1053_v57 }
 0xe43   :  { %1056 = vst.msk [vmem:[#allocation8] sm:$0x1] %vm103_vm0, %v1055_v58 }
 0xe44 PF:  { %s1499_s21 = sld [smem:[#allocation3 + $0x7]] }
 0xe4a   :  { %p1500_p7 = scmp.ne.s32.totalorder %s1499_s21, 1 }
 0xe4b   :  { %s1869_s22 = smov (!%p1500_p7), 1   ;;  %s1870_s23 = smov (!%p1500_p7), 127  }
 0xe4c   :  { %1061 = sbr.rel (%p1500_p7) target bundleno = 4169 (0x1049), region = 61  ;;  %s1871_s24 = smov (!%p1500_p7), 126  }
 0xe4d   :  { %s1872_s25 = smov (!%p1500_p7), 125  }
 0xe51   :  { %v1710_v59 = vpack.i.bf16 %v1958_v20, %v1960_v21  ;;  %v1720_v60 = vpack.i.bf16 %v1966_v26, %v1970_v28  ;;  %v1725_v61 = vpack.i.bf16 %v1962_v22, %v1964_v23  ;;  %v1715_v62 = vpack.i.bf16 %v1968_v27, %v1972_v29 }
 0xe52   :  { %vm1090_vm5 = vcmask 7168   ;;  %v1501_v50 = vadd.f32 -0.05, %v1956_v14 }
 0xe53   :  { %1711 = vrot.lane.b32.xlu0 %v1710_v59, %s1869_s22  ;;  %1721 = vrot.lane.b32.xlu1 %v1720_v60, %s1869_s22 }
 0xe54   :  { %1726 = vrot.lane.b32.xlu2 %v1725_v61, %s1869_s22 }
 0xe5b   :  { %1716 = vrot.lane.b32.xlu0 %v1715_v62, %s1869_s22 }
 0xe5c   :  { %1136 = vrot.lane.b32.xlu2 %v1956_v14, %s1870_s23 }
 0xeae   :  { %v1727_v25 = vpop.permute.xlu2 %1726 }
 0xeaf   :  { %v1729_v34 = vunpack.i.h.bf16 %v1727_v25  ;;  %v1728_v35 = vunpack.i.l.bf16 %v1727_v25 }
 0xeb1   :  { %v1091_v15 = vsel %vm1090_vm5, %v1729_v34, %v1728_v35  ;;  %v1103_v5 = vsel %vm1090_vm5, %v1728_v35, %v1729_v34 }
 0xeb2   :  { %v1107_v45 = vmul.f32 %v1103_v5, %v1937_v6  ;;  %v1108_v46 = vmul.f32 %v1091_v15, %v1939_v7 }
 0xeb4   :  { %v1115_v47 = vadd.f32 %v1108_v46, %v1107_v45 }
 0xeb6   :  { %v1137_v48 = vpop.permute.xlu2 %1136 }
 0xeb7   :  { %v1139_v49 = vadd.f32 %v1137_v48, %v1956_v14 }
 0xec5   :  { %v1712_v63 = vpop.permute.xlu0 %1711  ;;  %v1722_v16 = vpop.permute.xlu1 %1721 }
 0xec6   :  { %v1714_v1 = vunpack.i.h.bf16 %v1712_v63  ;;  %v1713_v2 = vunpack.i.l.bf16 %v1712_v63  ;;  %v1724_v30 = vunpack.i.h.bf16 %v1722_v16  ;;  %v1723_v31 = vunpack.i.l.bf16 %v1722_v16 }
 0xec7   :  { %v1127_v63 = vadd.f32 0.05, %v1956_v14 }
 0xec8   :  { %v1093_v3 = vsel %vm1090_vm5, %v1714_v1, %v1713_v2  ;;  %v1105_v4 = vsel %vm1090_vm5, %v1713_v2, %v1714_v1 }
 0xec9   :  { %v1111_v17 = vmul.f32 %v1105_v4, %v1945_v10  ;;  %v1112_v18 = vmul.f32 %v1093_v3, %v1947_v11 }
 0xecb   :  { %v1121_v19 = vadd.f32 %v1112_v18, %v1111_v17 }
 0xecd   :  { %v1717_v0 = vpop.permute.xlu0 %1716  ;;  %1122 = vadd.xlane.f32.xlu1 %v1121_v19 }
 0xece   :  { %v1719_v32 = vunpack.i.h.bf16 %v1717_v0  ;;  %v1718_v33 = vunpack.i.l.bf16 %v1717_v0 }
 0xed0   :  { %v1094_v36 = vsel %vm1090_vm5, %v1724_v30, %v1719_v32  ;;  %v1106_v37 = vsel %vm1090_vm5, %v1719_v32, %v1724_v30  ;;  %v1092_v38 = vsel %vm1090_vm5, %v1723_v31, %v1718_v33  ;;  %v1104_v39 = vsel %vm1090_vm5, %v1718_v33, %v1723_v31 }
 0xed1   :  { %v1113_v40 = vmul.f32 %v1106_v37, %v1949_v12  ;;  %v1114_v24 = vmul.f32 %v1094_v36, %v1951_v13  ;;  %v1109_v41 = vmul.f32 %v1104_v39, %v1941_v8  ;;  %v1110_v42 = vmul.f32 %v1092_v38, %v1943_v9 }
 0xed3   :  { %v1124_v43 = vadd.f32 %v1114_v24, %v1113_v40  ;;  %v1118_v44 = vadd.f32 %v1110_v42, %v1109_v41 }
 0xed5   :  { %1125 = vadd.xlane.f32.xlu0 %v1124_v43  ;;  %1119 = vadd.xlane.f32.xlu2 %v1118_v44 }
 0xedd   :  { %1116 = vadd.xlane.f32.xlu0 %v1115_v47 }
 0xeed   :  { %1141 = vrot.lane.b32.xlu2 %v1139_v49, %s1871_s24 }
 0xef1   :  { %1131 = vrot.lane.b32.xlu0 %v1501_v50, %s1870_s23 }
 0xf40   :  { %v1123_v51 = vpop.xlane.xlu1 %1122 }
 0xf41   :  { %v1156_v52 = vmin.f32 %v1123_v51, %v1956_v14 }
 0xf43   :  { %1158 = vrot.lane.b32.xlu1 %v1156_v52, %s1869_s22 }
 0xf48   :  { %v1126_v53 = vpop.xlane.xlu0 %1125  ;;  %v1120_v54 = vpop.xlane.xlu2 %1119 }
 0xf49   :  { %v1149_v55 = vmin.f32 %v1120_v54, %v1501_v50  ;;  %v1146_v57 = vadd.f32 %v1126_v53, %v1123_v51  ;;  %v1155_v60 = vmin.f32 %v1126_v53, %v1956_v14  ;;  %v1197_v51 = vld [vmem:[#allocation8] sm:$0x1] }
 0xf4b   :  { %1151 = vrot.lane.b32.xlu1 %v1149_v55, %s1870_s23 }
 0xf50   :  { %v1117_v56 = vpop.xlane.xlu0 %1116  ;;  %v1142_v2 = vpop.permute.xlu2 %1141 }
 0xf51   :  { %v1145_v58 = vadd.f32 %v1120_v54, %v1117_v56  ;;  %v1148_v4 = vmin.f32 %v1117_v56, %v1127_v63 }
 0xf53   :  { %v1147_v59 = vmul.f32 %v1146_v57, %v1145_v58 }
 0xf63   :  { %v1132_v1 = vpop.permute.xlu0 %1131 }
 0xf64   :  { %v1134_v3 = vadd.f32 %v1132_v1, %v1127_v63 }
 0xf66   :  { %v1144_v17 = vmul.f32 %v1142_v2, %v1134_v3 }
 0xf68   :  { %v1167_v25 = vadd.f32 %v1147_v59, %v1144_v17 }
 0xfb5   :  { %v1159_v61 = vpop.permute.xlu1 %1158 }
 0xfb6   :  { %v1161_v62 = vadd.f32 %v1159_v61, %v1155_v60 }
 0xfb8   :  { %1163 = vrot.lane.b32.xlu2 %v1161_v62, %s1872_s25 }
 0xfbd   :  { %v1152_v16 = vpop.permute.xlu1 %1151 }
 0xfbe   :  { %v1154_v18 = vadd.f32 %v1152_v16, %v1148_v4 }
0x1012   :  { %v1164_v19 = vpop.permute.xlu2 %1163 }
0x1013   :  { %v1166_v30 = vmul.f32 %v1164_v19, %v1154_v18 }
0x1015   :  { %v1168_v31 = vsub.f32 %v1167_v25, %v1166_v30  ;;  %v1169_v40 = vadd.f32 1.0, %v1166_v30 }
0x1017   :  { %v1170_v0 = vadd.f32 1.0, %v1168_v31 }
0x1019   :  { %1730 = vrcp.f32 %v1170_v0  ;;  %v1182_v35 = vand.u32 2147483648, %v1170_v0  ;;  %v1180_v37 = vand.u32 2147483647, %v1170_v0  ;;  %vm1176_vm7 = vweird.f32 %v1170_v0 }
0x101b   :  { %v1183_v39 = vor.u32 1.1754944e-38, %v1182_v35  ;;  %vm1181_vm9 = vcmp.eq.f32.partialorder %v1180_v37, 8.507059e+37 }
0x101f   :  { %v1731_v32 = vpop.eup %1730 }
0x1020   :  { %v1172_v33 = vmul.f32 %v1731_v32, %v1170_v0  ;;  %vm1177_vm6 = vweird.f32 %v1731_v32 }
0x1021   :  { %vm1178_vm8 = vmor %vm1176_vm7, %vm1177_vm6 }
0x1022   :  { %v1173_v34 = vsub.f32 1.0, %v1172_v33 }
0x1024   :  { %v1174_v36 = vmul.f32 %v1731_v32, %v1173_v34 }
0x1026   :  { %v1175_v38 = vadd.f32 %v1731_v32, %v1174_v36 }
0x1028   :  { %v1179_v24 = vsel %vm1178_vm8, %v1731_v32, %v1175_v38 }
0x1029   :  { %v1184_v41 = vsel %vm1181_vm9, %v1183_v39, %v1179_v24 }
0x102a   :  { %v1185_v42 = vmul.f32 %v1184_v41, %v1169_v40 }
0x102c   :  { %1732 = vlog2.f32 %v1185_v42 }
0x1032   :  { %v1733_v15 = vpop.eup %1732 }
0x1033   :  { %v1187_v5 = vmul.f32 0.6931472, %v1733_v15 }
0x1035   :  { %v1188_v43 = vsub.f32 0.0, %v1187_v5 }
0x1037   :  { %v1189_v44 = vsel %vm1090_vm5, %v1188_v43, 0.0 }
0x1038   :  { %v1190_v45 = vrot.slane %v1189_v44, 4 }
0x103a   :  { %v1191_v46 = vadd.f32 %v1190_v45, %v1189_v44 }
0x103c   :  { %v1192_v47 = vrot.slane %v1191_v46, 2 }
0x103e   :  { %v1193_v48 = vadd.f32 %v1192_v47, %v1191_v46 }
0x1040   :  { %v1194_v49 = vrot.slane %v1193_v48, 1 }
0x1042   :  { %v1195_v50 = vadd.f32 %v1194_v49, %v1193_v48 }
0x1044   :  { %v1196_v52 = vmul.f32 0.125, %v1195_v50 }
0x1046   :  { %v1198_v53 = vadd.f32 %v1197_v51, %v1196_v52 }
0x1048   :  { %1199 = vst.msk [vmem:[#allocation8] sm:$0x1] %vm103_vm0, %v1198_v53 }
0x1049 PF:  { %s1502_s26 = sld [smem:[#allocation3 + $0x8]] }
0x104f   :  { %p1503_p8 = scmp.ne.s32.totalorder %s1502_s26, 1 }
0x1050   :  { %s1873_s27 = smov (!%p1503_p8), 17   ;;  %s1874_s28 = smov (!%p1503_p8), 127  }
0x1051   :  { %1204 = sbr.rel (%p1503_p8) target bundleno = 4710 (0x1266), region = 65  ;;  %s1875_s29 = smov (!%p1503_p8), 1  }
0x1052   :  { %s1876_s1 = smov (!%p1503_p8), 126   ;;  %s1877_s0 = smov (!%p1503_p8), 125  }
0x1056   :  { %v1734_v54 = vpack.i.bf16 %v1958_v20, %v1960_v21  ;;  %v1744_v55 = vpack.i.bf16 %v1966_v26, %v1970_v28  ;;  %v1749_v56 = vpack.i.bf16 %v1962_v22, %v1964_v23  ;;  %v1739_v57 = vpack.i.bf16 %v1968_v27, %v1972_v29 }
0x1057   :  { %vm1233_vm10 = vcmask 138240   ;;  %v1504_v43 = vadd.f32 -0.05, %v1956_v14  ;;  %v1270_v44 = vadd.f32 0.05, %v1956_v14  ;;  %vm1326_vm15 = vcmask 7168  }
0x1058   :  { %1735 = vrot.lane.b32.xlu0 %v1734_v54, %s1873_s27  ;;  %1745 = vrot.lane.b32.xlu1 %v1744_v55, %s1873_s27 }
0x1059   :  { %1750 = vrot.lane.b32.xlu2 %v1749_v56, %s1873_s27 }
0x1060   :  { %1740 = vrot.lane.b32.xlu0 %v1739_v57, %s1873_s27 }
0x10b3   :  { %v1751_v4 = vpop.permute.xlu2 %1750 }
0x10b4   :  { %v1753_v30 = vunpack.i.h.bf16 %v1751_v4  ;;  %v1752_v31 = vunpack.i.l.bf16 %v1751_v4 }
0x10b6   :  { %v1234_v39 = vsel %vm1233_vm10, %v1753_v30, %v1752_v31  ;;  %v1246_v40 = vsel %vm1233_vm10, %v1752_v31, %v1753_v30 }
0x10b7   :  { %v1250_v42 = vmul.f32 %v1246_v40, %v1937_v6  ;;  %v1251_v15 = vmul.f32 %v1234_v39, %v1939_v7 }
0x10b9   :  { %v1258_v5 = vadd.f32 %v1251_v15, %v1250_v42 }
0x10ca   :  { %v1736_v58 = vpop.permute.xlu0 %1735  ;;  %v1746_v63 = vpop.permute.xlu1 %1745 }
0x10cb   :  { %v1738_v59 = vunpack.i.h.bf16 %v1736_v58  ;;  %v1737_v60 = vunpack.i.l.bf16 %v1736_v58  ;;  %v1748_v16 = vunpack.i.h.bf16 %v1746_v63  ;;  %v1747_v17 = vunpack.i.l.bf16 %v1746_v63 }
0x10cd   :  { %v1236_v61 = vsel %vm1233_vm10, %v1738_v59, %v1737_v60  ;;  %v1248_v62 = vsel %vm1233_vm10, %v1737_v60, %v1738_v59 }
0x10ce   :  { %v1254_v1 = vmul.f32 %v1248_v62, %v1945_v10  ;;  %v1255_v2 = vmul.f32 %v1236_v61, %v1947_v11 }
0x10d0   :  { %v1264_v3 = vadd.f32 %v1255_v2, %v1254_v1 }
0x10d2   :  { %v1741_v18 = vpop.permute.xlu0 %1740  ;;  %1265 = vadd.xlane.f32.xlu1 %v1264_v3 }
0x10d3   :  { %v1743_v19 = vunpack.i.h.bf16 %v1741_v18  ;;  %v1742_v25 = vunpack.i.l.bf16 %v1741_v18 }
0x10d5   :  { %v1237_v0 = vsel %vm1233_vm10, %v1748_v16, %v1743_v19  ;;  %v1249_v32 = vsel %vm1233_vm10, %v1743_v19, %v1748_v16  ;;  %v1235_v33 = vsel %vm1233_vm10, %v1747_v17, %v1742_v25  ;;  %v1247_v34 = vsel %vm1233_vm10, %v1742_v25, %v1747_v17 }
0x10d6   :  { %v1256_v35 = vmul.f32 %v1249_v32, %v1949_v12  ;;  %v1257_v36 = vmul.f32 %v1237_v0, %v1951_v13  ;;  %v1252_v37 = vmul.f32 %v1247_v34, %v1941_v8  ;;  %v1253_v38 = vmul.f32 %v1235_v33, %v1943_v9 }
0x10d8   :  { %v1267_v24 = vadd.f32 %v1257_v36, %v1256_v35  ;;  %v1261_v41 = vadd.f32 %v1253_v38, %v1252_v37 }
0x10da   :  { %1268 = vadd.xlane.f32.xlu0 %v1267_v24  ;;  %1262 = vadd.xlane.f32.xlu2 %v1261_v41 }
0x10e2   :  { %1259 = vadd.xlane.f32.xlu0 %v1258_v5 }
0x10f2   :  { %1273 = vrot.lane.b32.xlu2 %v1504_v43, %s1874_s28 }
0x1145   :  { %v1266_v45 = vpop.xlane.xlu1 %1265 }
0x1146   :  { %v1293_v46 = vmin.f32 %v1266_v45, %v1270_v44 }
0x1148   :  { %1295 = vrot.lane.b32.xlu1 %v1293_v46, %s1875_s29 }
0x114d   :  { %v1269_v47 = vpop.xlane.xlu0 %1268  ;;  %v1263_v48 = vpop.xlane.xlu2 %1262 }
0x114e   :  { %v1286_v49 = vmin.f32 %v1263_v48, %v1504_v43  ;;  %v1283_v52 = vadd.f32 %v1269_v47, %v1266_v45  ;;  %v1292_v56 = vmin.f32 %v1269_v47, %v1504_v43 }
0x1150   :  { %1288 = vrot.lane.b32.xlu2 %v1286_v49, %s1874_s28 }
0x1155   :  { %v1260_v50 = vpop.xlane.xlu0 %1259  ;;  %v1274_v51 = vpop.permute.xlu2 %1273 }
0x1156   :  { %v1282_v53 = vadd.f32 %v1263_v48, %v1260_v50  ;;  %v1276_v54 = vadd.f32 %v1274_v51, %v1270_v44  ;;  %v1285_v60 = vmin.f32 %v1260_v50, %v1270_v44  ;;  %v1335_v44 = vld [vmem:[#allocation8] sm:$0x1] }
0x1158   :  { %v1284_v55 = vmul.f32 %v1283_v52, %v1282_v53  ;;  %1278 = vrot.lane.b32.xlu0 %v1276_v54, %s1876_s1 }
0x11aa   :  { %v1289_v61 = vpop.permute.xlu2 %1288 }
0x11ab   :  { %v1291_v63 = vadd.f32 %v1289_v61, %v1285_v60 }
0x11ba   :  { %v1296_v57 = vpop.permute.xlu1 %1295 }
0x11bb   :  { %v1298_v58 = vadd.f32 %v1296_v57, %v1292_v56 }
0x11bd   :  { %1300 = vrot.lane.b32.xlu1 %v1298_v58, %s1877_s0 }
0x11ca   :  { %v1279_v59 = vpop.permute.xlu0 %1278 }
0x11cb   :  { %v1281_v62 = vmul.f32 %v1279_v59, %v1276_v54 }
0x11cd   :  { %v1304_v2 = vadd.f32 %v1284_v55, %v1281_v62 }
0x122f   :  { %v1301_v1 = vpop.permute.xlu1 %1300 }
0x1230   :  { %v1303_v3 = vmul.f32 %v1301_v1, %v1291_v63 }
0x1232   :  { %v1305_v4 = vsub.f32 %v1304_v2, %v1303_v3  ;;  %v1306_v33 = vadd.f32 1.0, %v1303_v3 }
0x1234   :  { %v1307_v16 = vadd.f32 1.0, %v1305_v4 }
0x1236   :  { %1754 = vrcp.f32 %v1307_v16  ;;  %v1319_v25 = vand.u32 2147483648, %v1307_v16  ;;  %v1317_v31 = vand.u32 2147483647, %v1307_v16  ;;  %vm1313_vm12 = vweird.f32 %v1307_v16 }
0x1238   :  { %v1320_v32 = vor.u32 1.1754944e-38, %v1319_v25  ;;  %vm1318_vm14 = vcmp.eq.f32.partialorder %v1317_v31, 8.507059e+37 }
0x123c   :  { %v1755_v17 = vpop.eup %1754 }
0x123d   :  { %v1309_v18 = vmul.f32 %v1755_v17, %v1307_v16  ;;  %vm1314_vm11 = vweird.f32 %v1755_v17 }
0x123e   :  { %vm1315_vm13 = vmor %vm1313_vm12, %vm1314_vm11 }
0x123f   :  { %v1310_v19 = vsub.f32 1.0, %v1309_v18 }
0x1241   :  { %v1311_v30 = vmul.f32 %v1755_v17, %v1310_v19 }
0x1243   :  { %v1312_v0 = vadd.f32 %v1755_v17, %v1311_v30 }
0x1245   :  { %v1316_v34 = vsel %vm1315_vm13, %v1755_v17, %v1312_v0 }
0x1246   :  { %v1321_v35 = vsel %vm1318_vm14, %v1320_v32, %v1316_v34 }
0x1247   :  { %v1322_v36 = vmul.f32 %v1321_v35, %v1306_v33 }
0x1249   :  { %1756 = vlog2.f32 %v1322_v36 }
0x124f   :  { %v1757_v37 = vpop.eup %1756 }
0x1250   :  { %v1324_v38 = vmul.f32 0.6931472, %v1757_v37 }
0x1252   :  { %v1325_v39 = vsub.f32 0.0, %v1324_v38 }
0x1254   :  { %v1327_v40 = vsel %vm1326_vm15, %v1325_v39, 0.0 }
0x1255   :  { %v1328_v24 = vrot.slane %v1327_v40, 4 }
0x1257   :  { %v1329_v41 = vadd.f32 %v1328_v24, %v1327_v40 }
0x1259   :  { %v1330_v42 = vrot.slane %v1329_v41, 2 }
0x125b   :  { %v1331_v15 = vadd.f32 %v1330_v42, %v1329_v41 }
0x125d   :  { %v1332_v5 = vrot.slane %v1331_v15, 1 }
0x125f   :  { %v1333_v43 = vadd.f32 %v1332_v5, %v1331_v15 }
0x1261   :  { %v1334_v45 = vmul.f32 0.125, %v1333_v43 }
0x1263   :  { %v1336_v46 = vadd.f32 %v1335_v44, %v1334_v45 }
0x1265   :  { %1337 = vst.msk [vmem:[#allocation8] sm:$0x1] %vm103_vm0, %v1336_v46 }
0x1266 PF:  { %s1338_s30 = sld [smem:[#allocation2]] }
0x126c   :  { %p1505_p9 = scmp.le.s32.totalorder %s1338_s30, 0 }
0x126d   :  { %s1344_s6 = sld [smem:[#allocation2]] (!%p1505_p9) }
0x126e   :  { %1342 = sbr.rel (%p1505_p9) target bundleno = 4746 (0x128a), region = 69 }
0x1273   :  { %s1345_s3 = scvt.s32.f32 %s1344_s6  ;;  %v1343_v56 = vld [vmem:[#allocation8] sm:$0x1] }
0x1275   :  { %v1346_v47 = vstv %s1345_s3 }
0x1276   :  { %1758 = vrcp.f32 %v1346_v47  ;;  %v1358_v50 = vand.u32 2147483648, %v1346_v47  ;;  %vm1352_vm1 = vweird.f32 %v1346_v47  ;;  %v1356_v52 = vand.u32 2147483647, %v1346_v47 }
0x1278   :  { %v1359_v54 = vor.u32 1.1754944e-38, %v1358_v50  ;;  %vm1357_vm4 = vcmp.eq.f32.partialorder %v1356_v52, 8.507059e+37 }
0x127c   :  { %v1759_v48 = vpop.eup %1758 }
0x127d   :  { %v1348_v49 = vmul.f32 %v1759_v48, %v1346_v47  ;;  %vm1353_vm2 = vweird.f32 %v1759_v48 }
0x127e   :  { %vm1354_vm3 = vmor %vm1352_vm1, %vm1353_vm2 }
0x127f   :  { %v1349_v51 = vsub.f32 1.0, %v1348_v49 }
0x1281   :  { %v1350_v53 = vmul.f32 %v1759_v48, %v1349_v51 }
0x1283   :  { %v1351_v55 = vadd.f32 %v1759_v48, %v1350_v53 }
0x1285   :  { %v1355_v57 = vsel %vm1354_vm3, %v1759_v48, %v1351_v55 }
0x1286   :  { %v1360_v58 = vsel %vm1357_vm4, %v1359_v54, %v1355_v57 }
0x1287   :  { %v1361_v59 = vmul.f32 %v1360_v58, %v1343_v56 }
0x1289   :  { %1362 = vst.msk [vmem:[#allocation8] sm:$0x1] %vm103_vm0, %v1361_v59 }
0x128a PF:  { %s1363_s7 = sld [smem:[#allocation2]] }
0x1290   :  { %p1506_p10 = scmp.ne.s32.totalorder %s1363_s7, 0 }
0x1291   :  { %s1878_s8 = smov (!%p1506_p10), 127   ;;  %s1879_s9 = smov (!%p1506_p10), 1  }
0x1292   :  { %1367 = sbr.rel (%p1506_p10) target bundleno = 5141 (0x1415), region = 73  ;;  %s1880_s10 = smov (!%p1506_p10), 126  }
0x1293   :  { %s1881_s11 = smov (!%p1506_p10), 125  }
0x1297   :  { %v1374_v60 = vmul.f32 %v1966_v26, %v1949_v12  ;;  %v1375_v61 = vmul.f32 %v1968_v27, %v1951_v13  ;;  %v1372_v62 = vmul.f32 %v1958_v20, %v1945_v10  ;;  %v1373_v63 = vmul.f32 %v1960_v21, %v1947_v11 }
0x1298   :  { %v1370_v3 = vmul.f32 %v1970_v28, %v1941_v8  ;;  %v1371_v4 = vmul.f32 %v1972_v29, %v1943_v9  ;;  %v1368_v9 = vmul.f32 %v1962_v22, %v1937_v6  ;;  %v1369_v28 = vmul.f32 %v1964_v23, %v1939_v7 }
0x1299   :  { %v1385_v1 = vadd.f32 %v1375_v61, %v1374_v60  ;;  %v1382_v2 = vadd.f32 %v1373_v63, %v1372_v62  ;;  %vm1442_vm9 = vcmask 7168  }
0x129a   :  { %v1379_v12 = vadd.f32 %v1371_v4, %v1370_v3  ;;  %v1376_v29 = vadd.f32 %v1369_v28, %v1368_v9 }
0x129b   :  { %1386 = vadd.xlane.f32.xlu1 %v1385_v1  ;;  %1383 = vadd.xlane.f32.xlu0 %v1382_v2 }
0x12a3   :  { %1380 = vadd.xlane.f32.xlu0 %v1379_v12 }
0x12b4   :  { %1389 = vrot.lane.b32.xlu1 %v1956_v14, %s1878_s8 }
0x130e   :  { %v1387_v13 = vpop.xlane.xlu1 %1386  ;;  %v1384_v10 = vpop.xlane.xlu0 %1383 }
0x130f   :  { %v1399_v20 = vadd.f32 %v1387_v13, %v1384_v10  ;;  %v1409_v11 = vmin.f32 %v1384_v10, %v1956_v14  ;;  %v1408_v16 = vmin.f32 %v1387_v13, %v1956_v14 }
0x1311   :  { %1411 = vrot.lane.b32.xlu2 %v1409_v11, %s1879_s9 }
0x1316   :  { %v1381_v21 = vpop.xlane.xlu0 %1380 }
0x1317   :  { %v1402_v26 = vmin.f32 %v1381_v21, %v1956_v14 }
0x1319   :  { %1404 = vrot.lane.b32.xlu1 %v1402_v26, %s1878_s8 }
0x1326   :  { %v1390_v8 = vpop.permute.xlu1 %1389 }
0x1327   :  { %v1392_v27 = vadd.f32 %v1390_v8, %v1956_v14 }
0x1329   :  { %1394 = vrot.lane.b32.xlu0 %v1392_v27, %s1880_s10 }
0x133a   :  { %1377 = vadd.xlane.f32.xlu2 %v1376_v29 }
0x136b   :  { %v1412_v17 = vpop.permute.xlu2 %1411 }
0x136c   :  { %v1414_v18 = vadd.f32 %v1412_v17, %v1408_v16 }
0x136e   :  { %1416 = vrot.lane.b32.xlu0 %v1414_v18, %s1881_s11 }
0x138b   :  { %v1405_v0 = vpop.permute.xlu1 %1404 }
0x139b   :  { %v1395_v25 = vpop.permute.xlu0 %1394 }
0x139c   :  { %v1397_v6 = vmul.f32 %v1395_v25, %v1392_v27 }
0x13ad   :  { %v1378_v19 = vpop.xlane.xlu2 %1377 }
0x13ae   :  { %v1398_v30 = vadd.f32 %v1381_v21, %v1378_v19  ;;  %v1401_v31 = vmin.f32 %v1378_v19, %v1956_v14 }
0x13b0   :  { %v1400_v32 = vmul.f32 %v1399_v20, %v1398_v30  ;;  %v1407_v33 = vadd.f32 %v1405_v0, %v1401_v31 }
0x13b2   :  { %v1420_v7 = vadd.f32 %v1400_v32, %v1397_v6 }
0x13e0   :  { %v1417_v22 = vpop.permute.xlu0 %1416 }
0x13e1   :  { %v1419_v34 = vmul.f32 %v1417_v22, %v1407_v33 }
0x13e3   :  { %v1421_v23 = vsub.f32 %v1420_v7, %v1419_v34  ;;  %v1422_v42 = vadd.f32 1.0, %v1419_v34 }
0x13e5   :  { %v1423_v35 = vadd.f32 1.0, %v1421_v23 }
0x13e7   :  { %1760 = vrcp.f32 %v1423_v35  ;;  %v1435_v39 = vand.u32 2147483648, %v1423_v35  ;;  %v1433_v24 = vand.u32 2147483647, %v1423_v35  ;;  %vm1429_vm6 = vweird.f32 %v1423_v35 }
0x13e9   :  { %v1436_v14 = vor.u32 1.1754944e-38, %v1435_v39  ;;  %vm1434_vm8 = vcmp.eq.f32.partialorder %v1433_v24, 8.507059e+37 }
0x13ed   :  { %v1761_v36 = vpop.eup %1760 }
0x13ee   :  { %v1425_v37 = vmul.f32 %v1761_v36, %v1423_v35  ;;  %vm1430_vm5 = vweird.f32 %v1761_v36 }
0x13ef   :  { %vm1431_vm7 = vmor %vm1429_vm6, %vm1430_vm5 }
0x13f0   :  { %v1426_v38 = vsub.f32 1.0, %v1425_v37 }
0x13f2   :  { %v1427_v40 = vmul.f32 %v1761_v36, %v1426_v38 }
0x13f4   :  { %v1428_v41 = vadd.f32 %v1761_v36, %v1427_v40 }
0x13f6   :  { %v1432_v15 = vsel %vm1431_vm7, %v1761_v36, %v1428_v41 }
0x13f7   :  { %v1437_v5 = vsel %vm1434_vm8, %v1436_v14, %v1432_v15 }
0x13f8   :  { %v1438_v43 = vmul.f32 %v1437_v5, %v1422_v42 }
0x13fa   :  { %1762 = vlog2.f32 %v1438_v43 }
0x1400   :  { %v1763_v44 = vpop.eup %1762 }
0x1401   :  { %v1440_v45 = vmul.f32 0.6931472, %v1763_v44 }
0x1403   :  { %v1441_v46 = vsub.f32 0.0, %v1440_v45 }
0x1405   :  { %v1443_v47 = vsel %vm1442_vm9, %v1441_v46, 0.0 }
0x1406   :  { %v1444_v48 = vrot.slane %v1443_v47, 4 }
0x1408   :  { %v1445_v49 = vadd.f32 %v1444_v48, %v1443_v47 }
0x140a   :  { %v1446_v50 = vrot.slane %v1445_v49, 2 }
0x140c   :  { %v1447_v51 = vadd.f32 %v1446_v50, %v1445_v49 }
0x140e   :  { %v1448_v52 = vrot.slane %v1447_v51, 1 }
0x1410   :  { %v1449_v53 = vadd.f32 %v1448_v52, %v1447_v51 }
0x1412   :  { %v1450_v54 = vmul.f32 0.125, %v1449_v53 }
0x1414   :  { %1451 = vst.msk [vmem:[#allocation8] sm:$0x1] %vm103_vm0, %v1450_v54 }
0x1415 PF:  { %s1459_s4 = sshll.u32 %s2302_s5, 4  ;;  %s1882_s13 = smov [#allocation8]   ;;  %s1460_s4 = int_to_ptr.hbm [resolvable:$true] %s1459_s4 }
0x1416   :  { %s1457_s14 = sshll.u32 %s1882_s13, 4  ;;  %s1458_s14 = int_to_ptr.vmem [resolvable:$true] %s1457_s14 }
0x1417   :  { %1462 = dma.vmem_to_hbm [thread:$0]  %s1458_s14, 16, %s1460_s4, [#allocation5]  }
0x1418   :  { %1828 = dma.done.wait [#allocation5], 16  }
0x1419   :  { %1829 = vsyncadd [#allocation5], 4294967280 }
0x141a   :  { %1467 = vsyncpa [#allocation4], 1 }
0x141b   :  { %1468 = vsyncpa [#allocation5], 1 }
0x141c   :  { %1469 = vsyncpa [#allocation6], 1 }

</bundles_post_ra>
